<compile_context>
chip_gen: v5e
topology: v5e:2x2
jax: 0.10.0
libtpu: 0.0.40
codegen_flags: <defaults>
</compile_context>

<pallas_src>
import functools

import jax
import jax.numpy as jnp
from jax.experimental import pallas as pl
from jax.experimental.pallas import tpu as pltpu


def _round_up(x, m):
    return ((x + m - 1) // m) * m


def _vae_kernel(
    x_ref,        # (TB, IN_PAD)       f32
    w_enc_ref,    # (IN_PAD, E_HID)    bf16
    b_enc_ref,    # (1, E_HID)         f32
    w_ml_ref,     # (E_HID, 2*LAT)     f32   (mu || logvar heads fused)
    b_ml_ref,     # (1, 2*LAT)         f32
    w_fz_ref,     # (E_HID, D_HID)     f32   (= w_mu @ w_d1, eval-path fold)
    b_fz_ref,     # (1, D_HID)         f32   (= b_mu @ w_d1 + b_d1)
    w_dec2_ref,   # (D_HID, IN_PAD)    bf16
    b_dec2_ref,   # (1, IN_PAD)        f32
    xrec_ref,     # out: (TB, IN_PAD)  f32
    mulv_ref,     # out: (TB, 2*LAT)   f32   (mu || logvar)
):
    # ---- Encoder: h = relu(x @ W_enc + b_enc) ----
    x = x_ref[...].astype(jnp.bfloat16)
    h = jnp.dot(x, w_enc_ref[...], preferred_element_type=jnp.float32)
    h = jnp.maximum(h + b_enc_ref[...], 0.0)

    # ---- Fused mu / logvar heads (one matmul) ----
    mulv_ref[...] = (
        jnp.dot(h, w_ml_ref[...], preferred_element_type=jnp.float32)
        + b_ml_ref[...]
    )

    # ---- Decoder layer 1 with the rank-2 bottleneck pre-folded ----
    # hd = relu(mu @ w_d1 + b_d1) = relu(h @ (w_mu @ w_d1) + (b_mu @ w_d1 + b_d1))
    hd = jnp.dot(h, w_fz_ref[...], preferred_element_type=jnp.float32)
    hd = jnp.maximum(hd + b_fz_ref[...], 0.0)

    # ---- Decoder layer 2 + sigmoid (sigmoid input kept in f32) ----
    xr = jnp.dot(hd.astype(jnp.bfloat16), w_dec2_ref[...],
                 preferred_element_type=jnp.float32)
    xrec_ref[...] = jax.nn.sigmoid(xr + b_dec2_ref[...])


@jax.jit
def vae_forward(x_img, params):
    """x_img: (B, 1, 28, 28) float32 (NCHW).  Returns (x_recon, mu, logvar)."""
    B = x_img.shape[0]
    in_features = x_img.shape[1] * x_img.shape[2] * x_img.shape[3]
    (w_enc, b_enc, w_mu, b_mu, w_lv, b_lv, w_d1, b_d1, w_d2, b_d2) = params

    e_hidden = w_enc.shape[1]
    latent_dim = w_mu.shape[1]
    d_hidden = w_d1.shape[1]

    in_pad = _round_up(in_features, 128)              # 784 -> 896

    # ---- batch tiling (single grid point at small B; pipelined for large B) ----
    b_pad8 = _round_up(B, 8)
    if b_pad8 <= 512:
        tb, b_pad = b_pad8, b_pad8
    else:
        tb = 256
        b_pad = _round_up(B, tb)

    # ---- flatten + zero-pad input ----
    x = x_img.reshape(B, in_features)                 # x.view(B, -1)
    x = jnp.pad(x, ((0, b_pad - B), (0, in_pad - in_features)))

    # ---- pack / pre-fold parameters (fused into the jit; cheap) ----
    w_enc_p = jnp.pad(w_enc, ((0, in_pad - in_features), (0, 0))).astype(jnp.bfloat16)
    w_ml = jnp.concatenate([w_mu, w_lv], axis=1)      # (E_HID, 2*LAT)
    b_ml = jnp.concatenate([b_mu, b_lv], axis=1)      # (1, 2*LAT)
    w_fz = jnp.dot(w_mu, w_d1)                        # (E_HID, D_HID)
    b_fz = jnp.dot(b_mu, w_d1) + b_d1                 # (1, D_HID)
    w_d2_p = jnp.pad(w_d2, ((0, 0), (0, in_pad - in_features))).astype(jnp.bfloat16)
    b_d2_p = jnp.pad(b_d2, ((0, 0), (0, in_pad - in_features)))

    resident = lambda i: (0, 0)                       # weights stay in VMEM

    out_shapes = (
        jax.ShapeDtypeStruct((b_pad, in_pad), jnp.float32),        # x_recon (padded)
        jax.ShapeDtypeStruct((b_pad, 2 * latent_dim), jnp.float32),  # mu || logvar
    )

    xrec_p, mulv = pl.pallas_call(
        _vae_kernel,
        out_shape=out_shapes,
        grid=(b_pad // tb,),
        in_specs=[
            pl.BlockSpec((tb, in_pad), lambda i: (i, 0)),          # x
            pl.BlockSpec((in_pad, e_hidden), resident),            # w_enc (bf16)
            pl.BlockSpec((1, e_hidden), resident),                 # b_enc
            pl.BlockSpec((e_hidden, 2 * latent_dim), resident),    # w_ml
            pl.BlockSpec((1, 2 * latent_dim), resident),           # b_ml
            pl.BlockSpec((e_hidden, d_hidden), resident),          # w_fz
            pl.BlockSpec((1, d_hidden), resident),                 # b_fz
            pl.BlockSpec((d_hidden, in_pad), resident),            # w_dec2 (bf16)
            pl.BlockSpec((1, in_pad), resident),                   # b_dec2
        ],
        out_specs=(
            pl.BlockSpec((tb, in_pad), lambda i: (i, 0)),
            pl.BlockSpec((tb, 2 * latent_dim), lambda i: (i, 0)),
        ),
        compiler_params=pltpu.CompilerParams(
            dimension_semantics=("parallel",),
        ),
    )(x, w_enc_p, b_enc, w_ml, b_ml, w_fz, b_fz, w_d2_p, b_d2_p)

    x_recon = xrec_p[:B, :in_features]
    mu = mulv[:B, :latent_dim]
    logvar = mulv[:B, latent_dim:2 * latent_dim]
    return x_recon, mu, logvar


def init_params(key, in_features, e_hidden, d_hidden, latent_dim):
    """Deterministic init mimicking torch.nn.Linear default (U[-1/sqrt(fan_in), ...])."""
    def linear(k, fan_in, fan_out):
        kw, kb = jax.random.split(k)
        bound = 1.0 / jnp.sqrt(fan_in)
        w = jax.random.uniform(kw, (fan_in, fan_out), jnp.float32, -bound, bound)
        b = jax.random.uniform(kb, (1, fan_out), jnp.float32, -bound, bound)
        return w, b

    ks = jax.random.split(key, 5)
    w_enc, b_enc = linear(ks[0], in_features, e_hidden)   # encoder.h
    w_mu, b_mu = linear(ks[1], e_hidden, latent_dim)      # encoder.mu
    w_lv, b_lv = linear(ks[2], e_hidden, latent_dim)      # encoder.logvar
    w_d1, b_d1 = linear(ks[3], latent_dim, d_hidden)      # decoder.h
    w_d2, b_d2 = linear(ks[4], d_hidden, in_features)     # decoder.x_recon
    return (w_enc, b_enc, w_mu, b_mu, w_lv, b_lv, w_d1, b_d1, w_d2, b_d2)


if __name__ == "__main__":
    # Module constants: in_features = 28*28 = 784, e_hidden = d_hidden = 256,
    # latent_dim = 2.  Small batch of MNIST-shaped NCHW images.
    B = 8
    IN_FEATURES = 28 * 28
    E_HIDDEN = 256
    D_HIDDEN = 256
    LATENT_DIM = 2

    key = jax.random.PRNGKey(0)
    k_x, k_p = jax.random.split(key)

    x_img = jax.random.uniform(k_x, (B, 1, 28, 28), jnp.float32)  # NCHW input
    params = init_params(k_p, IN_FEATURES, E_HIDDEN, D_HIDDEN, LATENT_DIM)

    x_recon, mu, logvar = vae_forward(x_img, params)
    jax.block_until_ready((x_recon, mu, logvar))

    assert x_recon.shape == (B, IN_FEATURES)
    assert mu.shape == (B, LATENT_DIM)
    assert logvar.shape == (B, LATENT_DIM)
    assert bool(jnp.all(jnp.isfinite(x_recon)))
    assert bool(jnp.all(jnp.isfinite(mu))) and bool(jnp.all(jnp.isfinite(logvar)))
    assert bool(jnp.all((x_recon >= 0.0) & (x_recon <= 1.0)))  # sigmoid range

    print("KERNEL_OK")
</pallas_src>

<mosaic_0001>
module attributes {stable_mosaic.version = 11 : i64} {
  func.func @_vae_kernel(%arg0: i32, %arg1: memref<8x896xf32, #tpu.memory_space<vmem>>, %arg2: memref<896x256xbf16, #tpu.memory_space<vmem>>, %arg3: memref<1x256xf32, #tpu.memory_space<vmem>>, %arg4: memref<256x4xf32, #tpu.memory_space<vmem>>, %arg5: memref<1x4xf32, #tpu.memory_space<vmem>>, %arg6: memref<256x256xf32, #tpu.memory_space<vmem>>, %arg7: memref<1x256xf32, #tpu.memory_space<vmem>>, %arg8: memref<256x896xbf16, #tpu.memory_space<vmem>>, %arg9: memref<1x896xf32, #tpu.memory_space<vmem>>, %arg10: memref<8x896xf32, #tpu.memory_space<vmem>>, %arg11: memref<8x4xf32, #tpu.memory_space<vmem>>) attributes {dimension_semantics = [#tpu.dimension_semantics<parallel>], iteration_bounds = array<i64: 1>, scalar_prefetch = 0 : i64, scratch_operands = 0 : i64, tpu.core_type = #tpu.core_type<tc>, window_params = [{transform_indices = @transform_0, window_bounds = array<i64: 8, 896>}, {pipeline_mode = #tpu.pipeline_mode<synchronous>, transform_indices = @transform_1, window_bounds = array<i64: 896, 256>}, {pipeline_mode = #tpu.pipeline_mode<synchronous>, transform_indices = @transform_2, window_bounds = array<i64: 1, 256>}, {pipeline_mode = #tpu.pipeline_mode<synchronous>, transform_indices = @transform_3, window_bounds = array<i64: 256, 4>}, {pipeline_mode = #tpu.pipeline_mode<synchronous>, transform_indices = @transform_4, window_bounds = array<i64: 1, 4>}, {pipeline_mode = #tpu.pipeline_mode<synchronous>, transform_indices = @transform_5, window_bounds = array<i64: 256, 256>}, {pipeline_mode = #tpu.pipeline_mode<synchronous>, transform_indices = @transform_6, window_bounds = array<i64: 1, 256>}, {pipeline_mode = #tpu.pipeline_mode<synchronous>, transform_indices = @transform_7, window_bounds = array<i64: 256, 896>}, {pipeline_mode = #tpu.pipeline_mode<synchronous>, transform_indices = @transform_8, window_bounds = array<i64: 1, 896>}, {transform_indices = @transform_9, window_bounds = array<i64: 8, 896>}, {transform_indices = @transform_10, window_bounds = array<i64: 8, 4>}]} {
    %c0 = arith.constant 0 : index
    %c0_0 = arith.constant 0 : index
    %0 = vector.load %arg1[%c0, %c0_0] : memref<8x896xf32, #tpu.memory_space<vmem>>, vector<8x896xf32>
    %1 = arith.truncf %0 : vector<8x896xf32> to vector<8x896xbf16>
    %c0_1 = arith.constant 0 : index
    %c0_2 = arith.constant 0 : index
    %2 = vector.load %arg2[%c0_1, %c0_2] : memref<896x256xbf16, #tpu.memory_space<vmem>>, vector<896x256xbf16>
    %cst = arith.constant dense<0.000000e+00> : vector<8x256xf32>
    %3 = tpu.matmul %1, %2, %cst {dimension_numbers = #tpu.dot_dimension_numbers<[1], [0], [0], [1], [0, 0, 1, 1], [], []>} : vector<8x896xbf16>, vector<896x256xbf16>, vector<8x256xf32> -> vector<8x256xf32>
    %c0_3 = arith.constant 0 : index
    %c0_4 = arith.constant 0 : index
    %4 = vector.load %arg3[%c0_3, %c0_4] : memref<1x256xf32, #tpu.memory_space<vmem>>, vector<1x256xf32>
    %5 = vector.broadcast %4 : vector<1x256xf32> to vector<8x256xf32>
    %6 = arith.addf %3, %5 : vector<8x256xf32>
    %cst_5 = arith.constant 0.000000e+00 : f32
    %7 = vector.broadcast %cst_5 : f32 to vector<8x256xf32>
    %8 = arith.maximumf %6, %7 : vector<8x256xf32>
    %c0_6 = arith.constant 0 : index
    %c0_7 = arith.constant 0 : index
    %9 = vector.load %arg4[%c0_6, %c0_7] : memref<256x4xf32, #tpu.memory_space<vmem>>, vector<256x4xf32>
    %cst_8 = arith.constant dense<0.000000e+00> : vector<8x4xf32>
    %10 = tpu.matmul %8, %9, %cst_8 {dimension_numbers = #tpu.dot_dimension_numbers<[1], [0], [0], [1], [0, 0, 1, 1], [], []>} : vector<8x256xf32>, vector<256x4xf32>, vector<8x4xf32> -> vector<8x4xf32>
    %c0_9 = arith.constant 0 : index
    %c0_10 = arith.constant 0 : index
    %11 = vector.load %arg5[%c0_9, %c0_10] : memref<1x4xf32, #tpu.memory_space<vmem>>, vector<1x4xf32>
    %12 = vector.broadcast %11 : vector<1x4xf32> to vector<8x4xf32>
    %13 = arith.addf %10, %12 : vector<8x4xf32>
    %c0_11 = arith.constant 0 : index
    %c0_12 = arith.constant 0 : index
    %14 = vector.load %arg11[%c0_11, %c0_12] : memref<8x4xf32, #tpu.memory_space<vmem>>, vector<8x4xf32>
    tpu.vector_store %arg11[%c0_11, %c0_12], %13 {strides = array<i32>} : memref<8x4xf32, #tpu.memory_space<vmem>>, vector<8x4xf32>,
    %c0_13 = arith.constant 0 : index
    %c0_14 = arith.constant 0 : index
    %15 = vector.load %arg6[%c0_13, %c0_14] : memref<256x256xf32, #tpu.memory_space<vmem>>, vector<256x256xf32>
    %cst_15 = arith.constant dense<0.000000e+00> : vector<8x256xf32>
    %16 = tpu.matmul %8, %15, %cst_15 {dimension_numbers = #tpu.dot_dimension_numbers<[1], [0], [0], [1], [0, 0, 1, 1], [], []>} : vector<8x256xf32>, vector<256x256xf32>, vector<8x256xf32> -> vector<8x256xf32>
    %c0_16 = arith.constant 0 : index
    %c0_17 = arith.constant 0 : index
    %17 = vector.load %arg7[%c0_16, %c0_17] : memref<1x256xf32, #tpu.memory_space<vmem>>, vector<1x256xf32>
    %18 = vector.broadcast %17 : vector<1x256xf32> to vector<8x256xf32>
    %19 = arith.addf %16, %18 : vector<8x256xf32>
    %cst_18 = arith.constant 0.000000e+00 : f32
    %20 = vector.broadcast %cst_18 : f32 to vector<8x256xf32>
    %21 = arith.maximumf %19, %20 : vector<8x256xf32>
    %22 = arith.truncf %21 : vector<8x256xf32> to vector<8x256xbf16>
    %c0_19 = arith.constant 0 : index
    %c0_20 = arith.constant 0 : index
    %23 = vector.load %arg8[%c0_19, %c0_20] : memref<256x896xbf16, #tpu.memory_space<vmem>>, vector<256x896xbf16>
    %cst_21 = arith.constant dense<0.000000e+00> : vector<8x896xf32>
    %24 = tpu.matmul %22, %23, %cst_21 {dimension_numbers = #tpu.dot_dimension_numbers<[1], [0], [0], [1], [0, 0, 1, 1], [], []>} : vector<8x256xbf16>, vector<256x896xbf16>, vector<8x896xf32> -> vector<8x896xf32>
    %c0_22 = arith.constant 0 : index
    %c0_23 = arith.constant 0 : index
    %25 = vector.load %arg9[%c0_22, %c0_23] : memref<1x896xf32, #tpu.memory_space<vmem>>, vector<1x896xf32>
    %26 = vector.broadcast %25 : vector<1x896xf32> to vector<8x896xf32>
    %27 = arith.addf %24, %26 : vector<8x896xf32>
    %28 = arith.negf %27 : vector<8x896xf32>
    %29 = math.exp %28 : vector<8x896xf32>
    %cst_24 = arith.constant 1.000000e+00 : f32
    %30 = vector.broadcast %cst_24 : f32 to vector<8x896xf32>
    %31 = arith.addf %30, %29 : vector<8x896xf32>
    %32 = arith.divf %30, %31 : vector<8x896xf32>
    %c0_25 = arith.constant 0 : index
    %c0_26 = arith.constant 0 : index
    %33 = vector.load %arg10[%c0_25, %c0_26] : memref<8x896xf32, #tpu.memory_space<vmem>>, vector<8x896xf32>
    tpu.vector_store %arg10[%c0_25, %c0_26], %32 {strides = array<i32>} : memref<8x896xf32, #tpu.memory_space<vmem>>, vector<8x896xf32>,
    return
  }
  func.func @transform_0(%arg0: i32) -> (i32, i32) {
    %c0_i32 = arith.constant 0 : i32
    %c0_i32_0 = arith.constant 0 : i32
    return %arg0, %c0_i32 : i32, i32
  }
  func.func @transform_1(%arg0: i32) -> (i32, i32) {
    %c0_i32 = arith.constant 0 : i32
    %c0_i32_0 = arith.constant 0 : i32
    %c0_i32_1 = arith.constant 0 : i32
    return %c0_i32, %c0_i32_0 : i32, i32
  }
  func.func @transform_2(%arg0: i32) -> (i32, i32) {
    %c0_i32 = arith.constant 0 : i32
    %c0_i32_0 = arith.constant 0 : i32
    %c0_i32_1 = arith.constant 0 : i32
    return %c0_i32, %c0_i32_0 : i32, i32
  }
  func.func @transform_3(%arg0: i32) -> (i32, i32) {
    %c0_i32 = arith.constant 0 : i32
    %c0_i32_0 = arith.constant 0 : i32
    %c0_i32_1 = arith.constant 0 : i32
    return %c0_i32, %c0_i32_0 : i32, i32
  }
  func.func @transform_4(%arg0: i32) -> (i32, i32) {
    %c0_i32 = arith.constant 0 : i32
    %c0_i32_0 = arith.constant 0 : i32
    %c0_i32_1 = arith.constant 0 : i32
    return %c0_i32, %c0_i32_0 : i32, i32
  }
  func.func @transform_5(%arg0: i32) -> (i32, i32) {
    %c0_i32 = arith.constant 0 : i32
    %c0_i32_0 = arith.constant 0 : i32
    %c0_i32_1 = arith.constant 0 : i32
    return %c0_i32, %c0_i32_0 : i32, i32
  }
  func.func @transform_6(%arg0: i32) -> (i32, i32) {
    %c0_i32 = arith.constant 0 : i32
    %c0_i32_0 = arith.constant 0 : i32
    %c0_i32_1 = arith.constant 0 : i32
    return %c0_i32, %c0_i32_0 : i32, i32
  }
  func.func @transform_7(%arg0: i32) -> (i32, i32) {
    %c0_i32 = arith.constant 0 : i32
    %c0_i32_0 = arith.constant 0 : i32
    %c0_i32_1 = arith.constant 0 : i32
    return %c0_i32, %c0_i32_0 : i32, i32
  }
  func.func @transform_8(%arg0: i32) -> (i32, i32) {
    %c0_i32 = arith.constant 0 : i32
    %c0_i32_0 = arith.constant 0 : i32
    %c0_i32_1 = arith.constant 0 : i32
    return %c0_i32, %c0_i32_0 : i32, i32
  }
  func.func @transform_9(%arg0: i32) -> (i32, i32) {
    %c0_i32 = arith.constant 0 : i32
    %c0_i32_0 = arith.constant 0 : i32
    return %arg0, %c0_i32 : i32, i32
  }
  func.func @transform_10(%arg0: i32) -> (i32, i32) {
    %c0_i32 = arith.constant 0 : i32
    %c0_i32_0 = arith.constant 0 : i32
    return %arg0, %c0_i32 : i32, i32
  }
}

</mosaic_0001>

<bundles_post_ra>
// kernel: vae_forward.1
= control target key start
LH: loop header
LB: loop body
LE: loop exit
PB: predicated region body
PF: predicated region fallthrough
CT: control target
= control target key end

     0   :  { %s5174_s0 = inlined_call_operand.vmem [shape: f32[8,896], index: 0, kind: input, shape index: {}]   ;;  %s5175_s1 = inlined_call_operand.vmem [shape: bf16[896,256], index: 1, kind: input, shape index: {}]   ;;  %s5176_s2 = inlined_call_operand.vmem [shape: f32[1,256], index: 2, kind: input, shape index: {}]   ;;  %s5177_s3 = inlined_call_operand.vmem [shape: f32[256,4], index: 3, kind: input, shape index: {}]   ;;  %s5178_s4 = inlined_call_operand.vmem [shape: f32[1,4], index: 4, kind: input, shape index: {}]   ;;  %s5179_s5 = inlined_call_operand.vmem [shape: f32[256,256], index: 5, kind: input, shape index: {}]   ;;  %s5180_s6 = inlined_call_operand.vmem [shape: f32[1,256], index: 6, kind: input, shape index: {}]   ;;  %s5181_s7 = inlined_call_operand.vmem [shape: bf16[256,896], index: 7, kind: input, shape index: {}]   ;;  %s5182_s8 = inlined_call_operand.vmem [shape: f32[1,896], index: 8, kind: input, shape index: {}]   ;;  %s5183_s9 = inlined_call_operand.hbm [shape: f32[8,896], index: 9, kind: output, shape index: {0}]   ;;  %s5184_s10 = inlined_call_operand.vmem [shape: f32[8,4], index: 10, kind: output, shape index: {1}]  }
   0x1   :  { %v2263_v0 = vld [vmem:[%s5175_s1 + $0x70] sm:$0xf]  ;;  %v3123_v1 = vld [vmem:[%s5175_s1 + $0x74] sm:$0xf0]  ;;  %v2255_v9 = vld [vmem:[%s5175_s1 + $0x60] sm:$0xf] }
   0x2   :  { %v2327_v2 = vld [vmem:[%s5175_s1 + $0xf0] sm:$0xf]  ;;  %v2264_v3 = vor.u32 %v3123_v1, %v2263_v0  ;;  %v3139_v4 = vld [vmem:[%s5175_s1 + $0xf4] sm:$0xf0]  ;;  %v3121_v10 = vld [vmem:[%s5175_s1 + $0x64] sm:$0xf0] }
   0x3   :  { %v2391_v5 = vld [vmem:[%s5175_s1 + $0x170] sm:$0xf]  ;;  %v3155_v6 = vld [vmem:[%s5175_s1 + $0x174] sm:$0xf0]  ;;  %v2328_v7 = vor.u32 %v3139_v4, %v2327_v2  ;;  %v2319_v11 = vld [vmem:[%s5175_s1 + $0xe0] sm:$0xf]  ;;  %v2256_v12 = vor.u32 %v3121_v10, %v2255_v9 }
   0x4   :  { %v2392_v8 = vor.u32 %v3155_v6, %v2391_v5  ;;  %727 = vmatpush.bf16.msra.mxu0 %v2264_v3  ;;  %v3137_v13 = vld [vmem:[%s5175_s1 + $0xe4] sm:$0xf0]  ;;  %v2383_v14 = vld [vmem:[%s5175_s1 + $0x160] sm:$0xf]  ;;  %v2247_v18 = vld [vmem:[%s5175_s1 + $0x50] sm:$0xf] }
   0x5   :  { %v3153_v15 = vld [vmem:[%s5175_s1 + $0x164] sm:$0xf0]  ;;  %740 = vmatpush.bf16.msra.mxu1 %v2328_v7  ;;  %v2320_v16 = vor.u32 %v3137_v13, %v2319_v11  ;;  %v3119_v19 = vld [vmem:[%s5175_s1 + $0x54] sm:$0xf0]  ;;  %v2311_v20 = vld [vmem:[%s5175_s1 + $0xd0] sm:$0xf] }
   0x6   :  { %753 = vmatpush.bf16.msra.mxu2 %v2392_v8  ;;  %v2384_v17 = vor.u32 %v3153_v15, %v2383_v14  ;;  %v3135_v21 = vld [vmem:[%s5175_s1 + $0xd4] sm:$0xf0]  ;;  %v2375_v22 = vld [vmem:[%s5175_s1 + $0x150] sm:$0xf]  ;;  %v2248_v24 = vor.u32 %v3119_v19, %v2247_v18  ;;  %v2239_v25 = vld [vmem:[%s5175_s1 + $0x40] sm:$0xf] }
   0x7   :  { %v3151_v23 = vld [vmem:[%s5175_s1 + $0x154] sm:$0xf0]  ;;  %v3117_v26 = vld [vmem:[%s5175_s1 + $0x44] sm:$0xf0]  ;;  %v2312_v27 = vor.u32 %v3135_v21, %v2311_v20  ;;  %v2303_v29 = vld [vmem:[%s5175_s1 + $0xc0] sm:$0xf] }
   0x8   :  { %728 = vmatpush.bf16.msra.mxu0 %v2256_v12  ;;  %v2376_v28 = vor.u32 %v3151_v23, %v2375_v22  ;;  %v2455_v30 = vld [vmem:[%s5175_s1 + $0x1f0] sm:$0xf]  ;;  %v3171_v31 = vld [vmem:[%s5175_s1 + $0x1f4] sm:$0xf0]  ;;  %v3133_v32 = vld [vmem:[%s5175_s1 + $0xc4] sm:$0xf0]  ;;  %v2240_v37 = vor.u32 %v3117_v26, %v2239_v25 }
   0x9   :  { %741 = vmatpush.bf16.msra.mxu1 %v2320_v16  ;;  %v2367_v33 = vld [vmem:[%s5175_s1 + $0x140] sm:$0xf]  ;;  %v3149_v34 = vld [vmem:[%s5175_s1 + $0x144] sm:$0xf0]  ;;  %v2456_v35 = vor.u32 %v3171_v31, %v2455_v30  ;;  %v2231_v38 = vld [vmem:[%s5175_s1 + $0x30] sm:$0xf]  ;;  %v2304_v41 = vor.u32 %v3133_v32, %v2303_v29 }
   0xa   :  { %754 = vmatpush.bf16.msra.mxu2 %v2384_v17  ;;  %v2447_v36 = vld [vmem:[%s5175_s1 + $0x1e0] sm:$0xf]  ;;  %v3115_v39 = vld [vmem:[%s5175_s1 + $0x34] sm:$0xf0]  ;;  %v3169_v40 = vld [vmem:[%s5175_s1 + $0x1e4] sm:$0xf0]  ;;  %v2368_v42 = vor.u32 %v3149_v34, %v2367_v33 }
   0xb   :  { %766 = vmatpush.bf16.msra.mxu3 %v2456_v35  ;;  %v2295_v43 = vld [vmem:[%s5175_s1 + $0xb0] sm:$0xf]  ;;  %v3131_v44 = vld [vmem:[%s5175_s1 + $0xb4] sm:$0xf0]  ;;  %v2448_v46 = vor.u32 %v3169_v40, %v2447_v36  ;;  %v2232_v50 = vor.u32 %v3115_v39, %v2231_v38  ;;  %v2223_v51 = vld [vmem:[%s5175_s1 + $0x20] sm:$0xf] }
   0xc   :  { %729 = vmatpush.bf16.msra.mxu0 %v2248_v24  ;;  %v2359_v45 = vld [vmem:[%s5175_s1 + $0x130] sm:$0xf]  ;;  %v3147_v47 = vld [vmem:[%s5175_s1 + $0x134] sm:$0xf0]  ;;  %v3113_v52 = vld [vmem:[%s5175_s1 + $0x24] sm:$0xf0]  ;;  %v2296_v54 = vor.u32 %v3131_v44, %v2295_v43 }
   0xd   :  { %742 = vmatpush.bf16.msra.mxu1 %v2312_v27  ;;  %v2439_v48 = vld [vmem:[%s5175_s1 + $0x1d0] sm:$0xf]  ;;  %v3167_v49 = vld [vmem:[%s5175_s1 + $0x1d4] sm:$0xf0]  ;;  %v2360_v55 = vor.u32 %v3147_v47, %v2359_v45  ;;  %v2287_v56 = vld [vmem:[%s5175_s1 + $0xa0] sm:$0xf]  ;;  %v2224_v62 = vor.u32 %v3113_v52, %v2223_v51 }
   0xe   :  { %755 = vmatpush.bf16.msra.mxu2 %v2376_v28  ;;  %v2440_v53 = vor.u32 %v3167_v49, %v2439_v48  ;;  %v2431_v57 = vld [vmem:[%s5175_s1 + $0x1c0] sm:$0xf]  ;;  %v3165_v58 = vld [vmem:[%s5175_s1 + $0x1c4] sm:$0xf0]  ;;  %v2215_v63 = vld [vmem:[%s5175_s1 + $0x10] sm:$0xf] }
   0xf   :  { %767 = vmatpush.bf16.msra.mxu3 %v2448_v46  ;;  %v3129_v59 = vld [vmem:[%s5175_s1 + $0xa4] sm:$0xf0]  ;;  %v2351_v60 = vld [vmem:[%s5175_s1 + $0x120] sm:$0xf]  ;;  %v3111_v0 = vld [vmem:[%s5175_s1 + $0x14] sm:$0xf0]  ;;  %v2432_v1 = vor.u32 %v3165_v58, %v2431_v57 }
  0x10   :  { %730 = vmatpush.bf16.msra.mxu0 %v2240_v37  ;;  %v3145_v61 = vld [vmem:[%s5175_s1 + $0x124] sm:$0xf0]  ;;  %v2288_v2 = vor.u32 %v3129_v59, %v2287_v56  ;;  %v2279_v4 = vld [vmem:[%s5175_s1 + $0x90] sm:$0xf]  ;;  %v3163_v6 = vld [vmem:[%s5175_s1 + $0x1b4] sm:$0xf0]  ;;  %v2216_v10 = vor.u32 %v3111_v0, %v2215_v63 }
  0x11   :  { %743 = vmatpush.bf16.msra.mxu1 %v2304_v41  ;;  %v2352_v3 = vor.u32 %v3145_v61, %v2351_v60  ;;  %v2423_v5 = vld [vmem:[%s5175_s1 + $0x1b0] sm:$0xf]  ;;  %v3127_v7 = vld [vmem:[%s5175_s1 + $0x94] sm:$0xf0]  ;;  %v2207_v11 = vld [vmem:[%s5175_s1] sm:$0xf] }
  0x12   :  { %756 = vmatpush.bf16.msra.mxu2 %v2368_v42  ;;  %v2343_v8 = vld [vmem:[%s5175_s1 + $0x110] sm:$0xf]  ;;  %v3143_v9 = vld [vmem:[%s5175_s1 + $0x114] sm:$0xf0]  ;;  %v3109_v12 = vld [vmem:[%s5175_s1 + $0x4] sm:$0xf0]  ;;  %v2424_v14 = vor.u32 %v3163_v6, %v2423_v5  ;;  %v2280_v15 = vor.u32 %v3127_v7, %v2279_v4 }
  0x13   :  { %768 = vmatpush.bf16.msra.mxu3 %v2440_v53  ;;  %v2271_v13 = vld [vmem:[%s5175_s1 + $0x80] sm:$0xf]  ;;  %v2344_v16 = vor.u32 %v3143_v9, %v2343_v8  ;;  %v3125_v17 = vld [vmem:[%s5175_s1 + $0x84] sm:$0xf0]  ;;  %v2519_v22 = vld [vmem:[%s5175_s1 + $0x270] sm:$0xf]  ;;  %v2208_v26 = vor.u32 %v3109_v12, %v2207_v11 }
  0x14   :  { %731 = vmatpush.bf16.msra.mxu0 %v2232_v50  ;;  %v2415_v18 = vld [vmem:[%s5175_s1 + $0x1a0] sm:$0xf]  ;;  %v3161_v19 = vld [vmem:[%s5175_s1 + $0x1a4] sm:$0xf0]  ;;  %v3187_v23 = vld [vmem:[%s5175_s1 + $0x274] sm:$0xf0]  ;;  %v2272_v30 = vor.u32 %v3125_v17, %v2271_v13 }
  0x15   :  { %744 = vmatpush.bf16.msra.mxu1 %v2296_v54  ;;  %v2335_v20 = vld [vmem:[%s5175_s1 + $0x100] sm:$0xf]  ;;  %v3141_v21 = vld [vmem:[%s5175_s1 + $0x104] sm:$0xf0]  ;;  %v2583_v24 = vld [vmem:[%s5175_s1 + $0x2f0] sm:$0xf]  ;;  %v2416_v29 = vor.u32 %v3161_v19, %v2415_v18  ;;  %v2520_v34 = vor.u32 %v3187_v23, %v2519_v22 }
  0x16   :  { %757 = vmatpush.bf16.msra.mxu2 %v2360_v55  ;;  %v3203_v25 = vld [vmem:[%s5175_s1 + $0x2f4] sm:$0xf0]  ;;  %v2647_v27 = vld [vmem:[%s5175_s1 + $0x370] sm:$0xf]  ;;  %v2336_v31 = vor.u32 %v3141_v21, %v2335_v20  ;;  %v2511_v36 = vld [vmem:[%s5175_s1 + $0x260] sm:$0xf] }
  0x17   :  { %769 = vmatpush.bf16.msra.mxu3 %v2432_v1  ;;  %v3219_v28 = vld [vmem:[%s5175_s1 + $0x374] sm:$0xf0]  ;;  %v2407_v32 = vld [vmem:[%s5175_s1 + $0x190] sm:$0xf]  ;;  %v2584_v35 = vor.u32 %v3203_v25, %v2583_v24  ;;  %v3185_v37 = vld [vmem:[%s5175_s1 + $0x264] sm:$0xf0] }
  0x18   :  { %732 = vmatpush.bf16.msra.mxu0 %v2224_v62  ;;  %v3159_v33 = vld [vmem:[%s5175_s1 + $0x194] sm:$0xf0]  ;;  %v2648_v38 = vor.u32 %v3219_v28, %v2647_v27  ;;  %v2575_v39 = vld [vmem:[%s5175_s1 + $0x2e0] sm:$0xf]  ;;  %v3201_v40 = vld [vmem:[%s5175_s1 + $0x2e4] sm:$0xf0]  ;;  %v2512_v50 = vor.u32 %v3185_v37, %v2511_v36 }
  0x19   :  { %745 = vmatpush.bf16.msra.mxu1 %v2288_v2  ;;  %v37_v41 = vld [vmem:[%s5174_s0 + $0x10] sm:$0xff]  ;;  %v2639_v42 = vld [vmem:[%s5175_s1 + $0x360] sm:$0xf]  ;;  %v3217_v43 = vld [vmem:[%s5175_s1 + $0x364] sm:$0xf0]  ;;  %v2408_v44 = vor.u32 %v3159_v33, %v2407_v32  ;;  %v2576_v51 = vor.u32 %v3201_v40, %v2575_v39 }
  0x1a   :  { %758 = vmatpush.bf16.msra.mxu2 %v2352_v3  ;;  %v3669_v45 = vpack.c.bf16 %v37_v41, %v37_v41  ;;  %v2503_v46 = vld [vmem:[%s5175_s1 + $0x250] sm:$0xf]  ;;  %v2399_v47 = vld [vmem:[%s5175_s1 + $0x180] sm:$0xf]  ;;  %v3157_v48 = vld [vmem:[%s5175_s1 + $0x184] sm:$0xf0]  ;;  %v2640_v56 = vor.u32 %v3217_v43, %v2639_v42 }
  0x1b   :  { %770 = vmatpush.bf16.msra.mxu3 %v2424_v14  ;;  %v35_v49 = vld [vmem:[%s5174_s0] sm:$0xff]  ;;  %v3122_v52 = vld [vmem:[%s5175_s1 + $0x74] sm:$0xf]  ;;  %v2265_v53 = vld [vmem:[%s5175_s1 + $0x78] sm:$0xf0]  ;;  %v2400_v63 = vor.u32 %v3157_v48, %v2399_v47 }
  0x1c   :  { %733 = vmatpush.bf16.msra.mxu0 %v2216_v10  ;;  %v3689_v54 = vpack.c.bf16 %v35_v49, %v35_v49  ;;  %v36_v55 = vld [vmem:[%s5174_s0 + $0x8] sm:$0xff]  ;;  %v3183_v57 = vld [vmem:[%s5175_s1 + $0x254] sm:$0xf0]  ;;  %v2567_v58 = vld [vmem:[%s5175_s1 + $0x2d0] sm:$0xf]  ;;  %v2268_v1 = vor.u32 %v3122_v52, %v2265_v53 }
  0x1d   :  { %746 = vmatpush.bf16.msra.mxu1 %v2280_v15  ;;  %v3199_v59 = vld [vmem:[%s5175_s1 + $0x2d4] sm:$0xf0]  ;;  %v3703_v60 = vpack.c.bf16 %v36_v55, %v36_v55  ;;  %v2631_v61 = vld [vmem:[%s5175_s1 + $0x350] sm:$0xf]  ;;  %v2495_v0 = vld [vmem:[%s5175_s1 + $0x240] sm:$0xf]  ;;  %v2504_v2 = vor.u32 %v3183_v57, %v2503_v46 }
  0x1e   :  { %759 = vmatpush.bf16.msra.mxu2 %v2344_v16  ;;  %v3215_v62 = vld [vmem:[%s5175_s1 + $0x354] sm:$0xf0]  ;;  %v2568_v3 = vor.u32 %v3199_v59, %v2567_v58  ;;  %v3181_v4 = vld [vmem:[%s5175_s1 + $0x244] sm:$0xf0]  ;;  %v3120_v5 = vld [vmem:[%s5175_s1 + $0x64] sm:$0xf] }
  0x1f   :  { %771 = vmatpush.bf16.msra.mxu3 %v2416_v29  ;;  %v2257_v6 = vld [vmem:[%s5175_s1 + $0x68] sm:$0xf0]  ;;  %v2632_v7 = vor.u32 %v3215_v62, %v2631_v61  ;;  %v2559_v8 = vld [vmem:[%s5175_s1 + $0x2c0] sm:$0xf]  ;;  %v3197_v9 = vld [vmem:[%s5175_s1 + $0x2c4] sm:$0xf0]  ;;  %v2496_v15 = vor.u32 %v3181_v4, %v2495_v0 }
  0x20   :  { %734 = vmatpush.bf16.msra.mxu0 %v2208_v26  ;;  %v38_v10 = vld [vmem:[%s5174_s0 + $0x18] sm:$0xff]  ;;  %v2623_v11 = vld [vmem:[%s5175_s1 + $0x340] sm:$0xf]  ;;  %v3213_v12 = vld [vmem:[%s5175_s1 + $0x344] sm:$0xf0]  ;;  %v2260_v14 = vor.u32 %v3120_v5, %v2257_v6  ;;  %v2560_v16 = vor.u32 %v3197_v9, %v2559_v8 }
  0x21   :  { %747 = vmatpush.bf16.msra.mxu1 %v2272_v30  ;;  %v3741_v13 = vpack.c.bf16 %v38_v10, %v38_v10  ;;  %v2487_v17 = vld [vmem:[%s5175_s1 + $0x230] sm:$0xf]  ;;  %v3118_v18 = vld [vmem:[%s5175_s1 + $0x54] sm:$0xf]  ;;  %v2249_v19 = vld [vmem:[%s5175_s1 + $0x58] sm:$0xf0]  ;;  %v2624_v20 = vor.u32 %v3213_v12, %v2623_v11 }
  0x22   :  { %760 = vmatpush.bf16.msra.mxu2 %v2336_v31  ;;  %v3179_v21 = vld [vmem:[%s5175_s1 + $0x234] sm:$0xf0]  ;;  %v2551_v22 = vld [vmem:[%s5175_s1 + $0x2b0] sm:$0xf]  ;;  %v2252_v26 = vor.u32 %v3118_v18, %v2249_v19  ;;  %v2479_v29 = vld [vmem:[%s5175_s1 + $0x220] sm:$0xf] }
  0x23   :  { %772 = vmatpush.bf16.msra.mxu3 %v2408_v44  ;;  %735 = vmatmul.bf16.vlgmr.msra.gmra.mxu0 %v3689_v54  ;;  %v3195_v23 = vld [vmem:[%s5175_s1 + $0x2b4] sm:$0xf0]  ;;  %v2615_v24 = vld [vmem:[%s5175_s1 + $0x330] sm:$0xf]  ;;  %v2488_v27 = vor.u32 %v3179_v21, %v2487_v17  ;;  %v3116_v30 = vld [vmem:[%s5175_s1 + $0x44] sm:$0xf] }
  0x24   :  { %779 = vmatpush.bf16.msrb.mxu0 %v2520_v34  ;;  %748 = vmatmul.bf16.vlgmr.msra.gmra.mxu1 %v3703_v60  ;;  %v3211_v25 = vld [vmem:[%s5175_s1 + $0x334] sm:$0xf0]  ;;  %v2552_v28 = vor.u32 %v3195_v23, %v2551_v22  ;;  %v2241_v31 = vld [vmem:[%s5175_s1 + $0x48] sm:$0xf0]  ;;  %v3177_v33 = vld [vmem:[%s5175_s1 + $0x224] sm:$0xf0] }
  0x25   :  { %792 = vmatpush.bf16.msrb.mxu1 %v2584_v35  ;;  %761 = vmatmul.bf16.vlgmr.msra.gmra.mxu2 %v3669_v45  ;;  %v2616_v32 = vor.u32 %v3211_v25, %v2615_v24  ;;  %v2543_v34 = vld [vmem:[%s5175_s1 + $0x2a0] sm:$0xf]  ;;  %v3193_v35 = vld [vmem:[%s5175_s1 + $0x2a4] sm:$0xf0]  ;;  %v2480_v39 = vor.u32 %v3177_v33, %v2479_v29  ;;  %v2471_v41 = vld [vmem:[%s5175_s1 + $0x210] sm:$0xf] }
  0x26   :  { %805 = vmatpush.bf16.msrb.mxu2 %v2648_v38  ;;  %v2607_v36 = vld [vmem:[%s5175_s1 + $0x320] sm:$0xf]  ;;  %v3209_v37 = vld [vmem:[%s5175_s1 + $0x324] sm:$0xf0]  ;;  %v2244_v38 = vor.u32 %v3116_v30, %v2241_v31  ;;  %v2544_v40 = vor.u32 %v3193_v35, %v2543_v34  ;;  %v3114_v42 = vld [vmem:[%s5175_s1 + $0x34] sm:$0xf] }
  0x27   :  { %773 = vmatpush.bf16.msra.mxu3 %v2400_v63  ;;  %v2233_v43 = vld [vmem:[%s5175_s1 + $0x38] sm:$0xf0]  ;;  %v2608_v44 = vor.u32 %v3209_v37, %v2607_v36  ;;  %v3175_v46 = vld [vmem:[%s5175_s1 + $0x214] sm:$0xf0]  ;;  %v2535_v47 = vld [vmem:[%s5175_s1 + $0x290] sm:$0xf] }
  0x28   :  { %780 = vmatpush.bf16.msrb.mxu0 %v2512_v50  ;;  %v3191_v48 = vld [vmem:[%s5175_s1 + $0x294] sm:$0xf0]  ;;  %v2599_v49 = vld [vmem:[%s5175_s1 + $0x310] sm:$0xf]  ;;  %v3173_v52 = vld [vmem:[%s5175_s1 + $0x204] sm:$0xf0]  ;;  %v2236_v53 = vor.u32 %v3114_v42, %v2233_v43  ;;  %v2472_v55 = vor.u32 %v3175_v46, %v2471_v41 }
  0x29   :  { %793 = vmatpush.bf16.msrb.mxu1 %v2576_v51  ;;  %v3207_v50 = vld [vmem:[%s5175_s1 + $0x314] sm:$0xf0]  ;;  %v2463_v51 = vld [vmem:[%s5175_s1 + $0x200] sm:$0xf]  ;;  %v3112_v58 = vld [vmem:[%s5175_s1 + $0x24] sm:$0xf] }
  0x2a   :  { %806 = vmatpush.bf16.msrb.mxu2 %v2640_v56  ;;  %774 = vmatmul.bf16.vlgmr.msra.gmra.mxu3 %v3741_v13  ;;  %v2536_v56 = vor.u32 %v3191_v48, %v2535_v47  ;;  %v2527_v57 = vld [vmem:[%s5175_s1 + $0x280] sm:$0xf]  ;;  %v2225_v59 = vld [vmem:[%s5175_s1 + $0x28] sm:$0xf0]  ;;  %v2600_v61 = vor.u32 %v3207_v50, %v2599_v49  ;;  %v3189_v62 = vld [vmem:[%s5175_s1 + $0x284] sm:$0xf0]  ;;  %v2464_v8 = vor.u32 %v3173_v52, %v2463_v51 }
  0x2b   :  { %818 = vmatpush.bf16.msrb.mxu3 %v2268_v1  ;;  %v2591_v63 = vld [vmem:[%s5175_s1 + $0x300] sm:$0xf]  ;;  %v3205_v0 = vld [vmem:[%s5175_s1 + $0x304] sm:$0xf0]  ;;  %v3138_v1 = vld [vmem:[%s5175_s1 + $0xf4] sm:$0xf]  ;;  %v2228_v5 = vor.u32 %v3112_v58, %v2225_v59  ;;  %v2528_v9 = vor.u32 %v3189_v62, %v2527_v57 }
  0x2c   :  { %781 = vmatpush.bf16.msrb.mxu0 %v2504_v2  ;;  %v2329_v2 = vld [vmem:[%s5175_s1 + $0xf8] sm:$0xf0]  ;;  %v3170_v6 = vld [vmem:[%s5175_s1 + $0x1f4] sm:$0xf]  ;;  %v39_v10 = vld [vmem:[%s5174_s0 + $0x20] sm:$0xff]  ;;  %v2592_v12 = vor.u32 %v3205_v0, %v2591_v63 }
  0x2d   :  { %794 = vmatpush.bf16.msrb.mxu1 %v2568_v3  ;;  %v3154_v3 = vld [vmem:[%s5175_s1 + $0x174] sm:$0xf]  ;;  %v2393_v4 = vld [vmem:[%s5175_s1 + $0x178] sm:$0xf0]  ;;  %v40_v11 = vld [vmem:[%s5174_s0 + $0x28] sm:$0xff]  ;;  %v3882_v23 = vpack.c.bf16 %v39_v10, %v39_v10 }
  0x2e   :  { %807 = vmatpush.bf16.msrb.mxu2 %v2632_v7  ;;  %v2457_v7 = vld [vmem:[%s5175_s1 + $0x1f8] sm:$0xf0]  ;;  %v2396_v18 = vor.u32 %v3154_v3, %v2393_v4  ;;  %v3136_v19 = vld [vmem:[%s5175_s1 + $0xe4] sm:$0xf]  ;;  %v2385_v24 = vld [vmem:[%s5175_s1 + $0x168] sm:$0xf0]  ;;  %v3887_v25 = vpack.c.bf16 %v40_v11, %v40_v11 }
  0x2f   :  { %819 = vmatpush.bf16.msrb.mxu3 %v2260_v14  ;;  %v2332_v14 = vor.u32 %v3138_v1, %v2329_v2  ;;  %v2217_v17 = vld [vmem:[%s5175_s1 + $0x18] sm:$0xf0]  ;;  %v3152_v21 = vld [vmem:[%s5175_s1 + $0x164] sm:$0xf]  ;;  %v2460_v22 = vor.u32 %v3170_v6, %v2457_v7  ;;  %v3134_v30 = vld [vmem:[%s5175_s1 + $0xd4] sm:$0xf] }
  0x30   :  { %782 = vmatpush.bf16.msrb.mxu0 %v2496_v15  ;;  %v41_v15 = vld [vmem:[%s5174_s0 + $0x30] sm:$0xff]  ;;  %v3108_v33 = vld [vmem:[%s5175_s1 + $0x4] sm:$0xf]  ;;  %v2209_v34 = vld [vmem:[%s5175_s1 + $0x8] sm:$0xf0]  ;;  %v2388_v35 = vor.u32 %v3152_v21, %v2385_v24 }
  0x31   :  { %795 = vmatpush.bf16.msrb.mxu1 %v2560_v16  ;;  %v3110_v16 = vld [vmem:[%s5175_s1 + $0x14] sm:$0xf]  ;;  %v2441_v42 = vld [vmem:[%s5175_s1 + $0x1d8] sm:$0xf0]  ;;  %v2212_v43 = vor.u32 %v3108_v33, %v2209_v34  ;;  %v3132_v46 = vld [vmem:[%s5175_s1 + $0xc4] sm:$0xf] }
  0x32   :  { %808 = vmatpush.bf16.msrb.mxu2 %v2624_v20  ;;  %v2321_v20 = vld [vmem:[%s5175_s1 + $0xe8] sm:$0xf0]  ;;  %v2220_v29 = vor.u32 %v3110_v16, %v2217_v17  ;;  %v3150_v36 = vld [vmem:[%s5175_s1 + $0x154] sm:$0xf]  ;;  %v3148_v50 = vld [vmem:[%s5175_s1 + $0x144] sm:$0xf] }
  0x33   :  { %820 = vmatpush.bf16.msrb.mxu3 %v2252_v26  ;;  %v3168_v26 = vld [vmem:[%s5175_s1 + $0x1e4] sm:$0xf]  ;;  %v2324_v31 = vor.u32 %v3136_v19, %v2321_v20  ;;  %v3186_v37 = vld [vmem:[%s5175_s1 + $0x274] sm:$0xf]  ;;  %v2305_v47 = vld [vmem:[%s5175_s1 + $0xc8] sm:$0xf0] }
  0x34   :  { %783 = vmatpush.bf16.msrb.mxu0 %v2488_v27  ;;  %v2449_v27 = vld [vmem:[%s5175_s1 + $0x1e8] sm:$0xf0]  ;;  %v3166_v41 = vld [vmem:[%s5175_s1 + $0x1d4] sm:$0xf]  ;;  %v3184_v51 = vld [vmem:[%s5175_s1 + $0x264] sm:$0xf]  ;;  %v2308_v59 = vor.u32 %v3132_v46, %v2305_v47 }
  0x35   :  { %796 = vmatpush.bf16.msrb.mxu1 %v2552_v28  ;;  %v3895_v28 = vpack.c.bf16 %v41_v15, %v41_v15  ;;  %v2513_v52 = vld [vmem:[%s5175_s1 + $0x268] sm:$0xf0]  ;;  %v3130_v58 = vld [vmem:[%s5175_s1 + $0xb4] sm:$0xf]  ;;  %v2361_v63 = vld [vmem:[%s5175_s1 + $0x138] sm:$0xf0] }
  0x36   :  { %809 = vmatpush.bf16.msrb.mxu2 %v2616_v32  ;;  %v2313_v32 = vld [vmem:[%s5175_s1 + $0xd8] sm:$0xf0]  ;;  %v2433_v57 = vld [vmem:[%s5175_s1 + $0x1c8] sm:$0xf0]  ;;  %v3146_v62 = vld [vmem:[%s5175_s1 + $0x134] sm:$0xf]  ;;  %v2516_v0 = vor.u32 %v3184_v51, %v2513_v52 }
  0x37   :  { %821 = vmatpush.bf16.msrb.mxu3 %v2244_v38  ;;  %v2521_v38 = vld [vmem:[%s5175_s1 + $0x278] sm:$0xf0]  ;;  %v3182_v2 = vld [vmem:[%s5175_s1 + $0x254] sm:$0xf] }
  0x38   :  { %784 = vmatpush.bf16.msrb.mxu0 %v2480_v39  ;;  %v2452_v39 = vor.u32 %v3168_v26, %v2449_v27  ;;  %v2524_v48 = vor.u32 %v3186_v37, %v2521_v38  ;;  %v2505_v3 = vld [vmem:[%s5175_s1 + $0x258] sm:$0xf0] }
  0x39   :  { %797 = vmatpush.bf16.msrb.mxu1 %v2544_v40  ;;  %v2377_v40 = vld [vmem:[%s5175_s1 + $0x158] sm:$0xf0] }
  0x3a   :  { %810 = vmatpush.bf16.msrb.mxu2 %v2608_v44  ;;  %v2316_v44 = vor.u32 %v3134_v30, %v2313_v32  ;;  %v2380_v49 = vor.u32 %v3150_v36, %v2377_v40  ;;  %v2425_v6 = vld [vmem:[%s5175_s1 + $0x1b8] sm:$0xf0] }
  0x3b   :  { %822 = vmatpush.bf16.msrb.mxu3 %v2236_v53  ;;  %v2444_v53 = vor.u32 %v3166_v41, %v2441_v42 }
  0x3c   :  { %785 = vmatpush.bf16.msrb.mxu0 %v2472_v55  ;;  %v2369_v55 = vld [vmem:[%s5175_s1 + $0x148] sm:$0xf0] }
  0x3d   :  { %798 = vmatpush.bf16.msrb.mxu1 %v2536_v56  ;;  %v3164_v56 = vld [vmem:[%s5175_s1 + $0x1c4] sm:$0xf]  ;;  %v2372_v1 = vor.u32 %v3148_v50, %v2369_v55 }
  0x3e   :  { %811 = vmatpush.bf16.msrb.mxu2 %v2600_v61  ;;  %v2297_v61 = vld [vmem:[%s5175_s1 + $0xb8] sm:$0xf0]  ;;  %v2436_v4 = vor.u32 %v3164_v56, %v2433_v57 }
  0x3f   :  { %823 = vmatpush.bf16.msrb.mxu3 %v2228_v5  ;;  %v3162_v5 = vld [vmem:[%s5175_s1 + $0x1b4] sm:$0xf] }
  0x40   :  { %786 = vmatpush.bf16.msrb.mxu0 %v2464_v8 }
  0x41   :  { %799 = vmatpush.bf16.msrb.mxu1 %v2528_v9 }
  0x42   :  { %812 = vmatpush.bf16.msrb.mxu2 %v2592_v12 }
  0x43   :  { %787 = vmatmul.bf16.vlgmr.msrb.gmra.mxu0 %v3882_v23  ;;  %824 = vmatpush.bf16.msrb.mxu3 %v2220_v29 }
  0x44   :  { %831 = vmatpush.bf16.msra.mxu0 %v2332_v14  ;;  %800 = vmatmul.bf16.vlgmr.msrb.gmra.mxu1 %v3887_v25 }
  0x45   :  { %844 = vmatpush.bf16.msra.mxu1 %v2396_v18  ;;  %813 = vmatmul.bf16.vlgmr.msrb.gmra.mxu2 %v3895_v28 }
  0x46   :  { %857 = vmatpush.bf16.msra.mxu2 %v2460_v22 }
  0x47   :  { %825 = vmatpush.bf16.msrb.mxu3 %v2212_v43 }
  0x48   :  { %832 = vmatpush.bf16.msra.mxu0 %v2324_v31 }
  0x49   :  { %845 = vmatpush.bf16.msra.mxu1 %v2388_v35 }
  0x4a   :  { %858 = vmatpush.bf16.msra.mxu2 %v2452_v39  ;;  %826 = vmatmul.bf16.vlgmr.msrb.gmra.mxu3 %v3689_v54 }
  0x4b   :  { %870 = vmatpush.bf16.msra.mxu3 %v2524_v48 }
  0x4c   :  { %833 = vmatpush.bf16.msra.mxu0 %v2316_v44 }
  0x4d   :  { %846 = vmatpush.bf16.msra.mxu1 %v2380_v49 }
  0x4e   :  { %859 = vmatpush.bf16.msra.mxu2 %v2444_v53 }
  0x4f   :  { %16 = vsyncpa [#allocation3], 0  ;;  %v2300_v7 = vor.u32 %v3130_v58, %v2297_v61  ;;  %871 = vmatpush.bf16.msra.mxu3 %v2516_v0  ;;  %v3128_v8 = vld [vmem:[%s5175_s1 + $0xa4] sm:$0xf]  ;;  %v2289_v9 = vld [vmem:[%s5175_s1 + $0xa8] sm:$0xf0]  ;;  %v2508_v10 = vor.u32 %v3182_v2, %v2505_v3  ;;  %v2364_v11 = vor.u32 %v3146_v62, %v2361_v63  ;;  %v2428_v15 = vor.u32 %v3162_v5, %v2425_v6 }
  0x50   :  { %834 = vmatpush.bf16.msra.mxu0 %v2308_v59  ;;  %v3144_v12 = vld [vmem:[%s5175_s1 + $0x124] sm:$0xf]  ;;  %v2497_v14 = vld [vmem:[%s5175_s1 + $0x248] sm:$0xf0]  ;;  %v2292_v19 = vor.u32 %v3128_v8, %v2289_v9  ;;  %v3126_v20 = vld [vmem:[%s5175_s1 + $0x94] sm:$0xf] }
  0x51   :  { %847 = vmatpush.bf16.msra.mxu1 %v2372_v1  ;;  %v3180_v54 = vld [vmem:[%s5175_s1 + $0x244] sm:$0xf]  ;;  %v2353_v16 = vld [vmem:[%s5175_s1 + $0x128] sm:$0xf0]  ;;  %v2281_v21 = vld [vmem:[%s5175_s1 + $0x98] sm:$0xf0] }
  0x52   :  { %860 = vmatpush.bf16.msra.mxu2 %v2436_v4  ;;  %v3160_v17 = vld [vmem:[%s5175_s1 + $0x1a4] sm:$0xf]  ;;  %v2417_v18 = vld [vmem:[%s5175_s1 + $0x1a8] sm:$0xf0]  ;;  %v2500_v22 = vor.u32 %v3180_v54, %v2497_v14  ;;  %v2356_v24 = vor.u32 %v3144_v12, %v2353_v16  ;;  %v3142_v26 = vld [vmem:[%s5175_s1 + $0x114] sm:$0xf]  ;;  %v2284_v34 = vor.u32 %v3126_v20, %v2281_v21 }
  0x53   :  { %872 = vmatpush.bf16.msra.mxu3 %v2508_v10  ;;  %v3178_v27 = vld [vmem:[%s5175_s1 + $0x234] sm:$0xf]  ;;  %v2489_v29 = vld [vmem:[%s5175_s1 + $0x238] sm:$0xf0]  ;;  %v2420_v30 = vor.u32 %v3160_v17, %v2417_v18  ;;  %v3124_v35 = vld [vmem:[%s5175_s1 + $0x84] sm:$0xf] }
  0x54   :  { %835 = vmatpush.bf16.msra.mxu0 %v2300_v7  ;;  %v2345_v31 = vld [vmem:[%s5175_s1 + $0x118] sm:$0xf0]  ;;  %v3158_v32 = vld [vmem:[%s5175_s1 + $0x194] sm:$0xf]  ;;  %v2273_v36 = vld [vmem:[%s5175_s1 + $0x88] sm:$0xf0]  ;;  %v2492_v38 = vor.u32 %v3178_v27, %v2489_v29 }
  0x55   :  { %848 = vmatpush.bf16.msra.mxu1 %v2364_v11  ;;  %v2409_v33 = vld [vmem:[%s5175_s1 + $0x198] sm:$0xf0]  ;;  %v3140_v37 = vld [vmem:[%s5175_s1 + $0x104] sm:$0xf]  ;;  %v2348_v39 = vor.u32 %v3142_v26, %v2345_v31  ;;  %v2337_v40 = vld [vmem:[%s5175_s1 + $0x108] sm:$0xf0]  ;;  %v2276_v51 = vor.u32 %v3124_v35, %v2273_v36 }
  0x56   :  { %861 = vmatpush.bf16.msra.mxu2 %v2428_v15  ;;  %v3176_v41 = vld [vmem:[%s5175_s1 + $0x224] sm:$0xf]  ;;  %v2481_v42 = vld [vmem:[%s5175_s1 + $0x228] sm:$0xf0]  ;;  %v2412_v43 = vor.u32 %v3158_v32, %v2409_v33  ;;  %v3202_v44 = vld [vmem:[%s5175_s1 + $0x2f4] sm:$0xf]  ;;  %v2340_v53 = vor.u32 %v3140_v37, %v2337_v40 }
  0x57   :  { %873 = vmatpush.bf16.msra.mxu3 %v2500_v22  ;;  %v2585_v46 = vld [vmem:[%s5175_s1 + $0x2f8] sm:$0xf0]  ;;  %v3218_v47 = vld [vmem:[%s5175_s1 + $0x374] sm:$0xf]  ;;  %v3156_v49 = vld [vmem:[%s5175_s1 + $0x184] sm:$0xf]  ;;  %v2484_v52 = vor.u32 %v3176_v41, %v2481_v42 }
  0x58   :  { %836 = vmatpush.bf16.msra.mxu0 %v2292_v19  ;;  %v2649_v48 = vld [vmem:[%s5175_s1 + $0x378] sm:$0xf0]  ;;  %v2401_v50 = vld [vmem:[%s5175_s1 + $0x188] sm:$0xf0]  ;;  %v2588_v55 = vor.u32 %v3202_v44, %v2585_v46  ;;  %v3174_v56 = vld [vmem:[%s5175_s1 + $0x214] sm:$0xf] }
  0x59   :  { %849 = vmatpush.bf16.msra.mxu1 %v2356_v24  ;;  %v2473_v57 = vld [vmem:[%s5175_s1 + $0x218] sm:$0xf0]  ;;  %v2652_v58 = vor.u32 %v3218_v47, %v2649_v48  ;;  %v3200_v59 = vld [vmem:[%s5175_s1 + $0x2e4] sm:$0xf]  ;;  %v2577_v61 = vld [vmem:[%s5175_s1 + $0x2e8] sm:$0xf0]  ;;  %v2404_v62 = vor.u32 %v3156_v49, %v2401_v50 }
  0x5a   :  { %862 = vmatpush.bf16.msra.mxu2 %v2420_v30  ;;  %v3216_v63 = vld [vmem:[%s5175_s1 + $0x364] sm:$0xf]  ;;  %v2641_v0 = vld [vmem:[%s5175_s1 + $0x368] sm:$0xf0]  ;;  %v2476_v1 = vor.u32 %v3174_v56, %v2473_v57  ;;  %v2580_v2 = vor.u32 %v3200_v59, %v2577_v61  ;;  %v926_v5 = vld [vmem:[%s5177_s3 + $0x78] sm:$0xff]  ;;  %vm987_vm0 = vcmask 31744  }
  0x5b   :  { %874 = vmatpush.bf16.msra.mxu3 %v2492_v38  ;;  %v3172_v3 = vld [vmem:[%s5175_s1 + $0x204] sm:$0xf]  ;;  %v2465_v4 = vld [vmem:[%s5175_s1 + $0x208] sm:$0xf0]  ;;  %v2644_v6 = vor.u32 %v3216_v63, %v2641_v0  ;;  %v3198_v7 = vld [vmem:[%s5175_s1 + $0x2d4] sm:$0xf] }
  0x5c   :  { %837 = vmatpush.bf16.msra.mxu0 %v2284_v34  ;;  %v2569_v8 = vld [vmem:[%s5175_s1 + $0x2d8] sm:$0xf0]  ;;  %v3214_v9 = vld [vmem:[%s5175_s1 + $0x354] sm:$0xf]  ;;  %v2468_v12 = vor.u32 %v3172_v3, %v2465_v4  ;;  %v3196_v15 = vld [vmem:[%s5175_s1 + $0x2c4] sm:$0xf] }
  0x5d   :  { %850 = vmatpush.bf16.msra.mxu1 %v2348_v39  ;;  %v2633_v10 = vld [vmem:[%s5175_s1 + $0x358] sm:$0xf0]  ;;  %v925_v11 = vld [vmem:[%s5177_s3 + $0x70] sm:$0xff]  ;;  %v2572_v54 = vor.u32 %v3198_v7, %v2569_v8  ;;  %v2561_v16 = vld [vmem:[%s5175_s1 + $0x2c8] sm:$0xf0]  ;;  %s2192_s26 = sshll.u32 %s5183_s9, 4  ;;  %s2193_s26 = int_to_ptr.hbm [resolvable:$true] %s2192_s26 }
  0x5e   :  { %863 = vmatpush.bf16.msra.mxu2 %v2412_v43  ;;  %v2636_v14 = vor.u32 %v3214_v9, %v2633_v10  ;;  %v923_v17 = vld [vmem:[%s5177_s3 + $0x60] sm:$0xff]  ;;  %v2564_v18 = vor.u32 %v3196_v15, %v2561_v16  ;;  %v922_v19 = vld [vmem:[%s5177_s3 + $0x58] sm:$0xff]  ;;  %v3194_v21 = vld [vmem:[%s5175_s1 + $0x2b4] sm:$0xf] }
  0x5f   :  { %875 = vmatpush.bf16.msra.mxu3 %v2484_v52  ;;  %v2553_v22 = vld [vmem:[%s5175_s1 + $0x2b8] sm:$0xf0]  ;;  %v3210_v24 = vld [vmem:[%s5175_s1 + $0x334] sm:$0xf]  ;;  %v920_v30 = vld [vmem:[%s5177_s3 + $0x48] sm:$0xff] }
  0x60   :  { %838 = vmatpush.bf16.msra.mxu0 %v2276_v51  ;;  %v2617_v26 = vld [vmem:[%s5175_s1 + $0x338] sm:$0xf0]  ;;  %v921_v27 = vld [vmem:[%s5177_s3 + $0x50] sm:$0xff]  ;;  %v2556_v29 = vor.u32 %v3194_v21, %v2553_v22  ;;  %v3192_v31 = vld [vmem:[%s5175_s1 + $0x2a4] sm:$0xf] }
  0x61   :  { %851 = vmatpush.bf16.msra.mxu1 %v2340_v53  ;;  %v2545_v32 = vld [vmem:[%s5175_s1 + $0x2a8] sm:$0xf0]  ;;  %v3208_v33 = vld [vmem:[%s5175_s1 + $0x324] sm:$0xf]  ;;  %v918_v37 = vld [vmem:[%s5177_s3 + $0x38] sm:$0xff] }
  0x62   :  { %864 = vmatpush.bf16.msra.mxu2 %v2404_v62  ;;  %v2609_v34 = vld [vmem:[%s5175_s1 + $0x328] sm:$0xf0]  ;;  %v919_v35 = vld [vmem:[%s5177_s3 + $0x40] sm:$0xff]  ;;  %v2548_v36 = vor.u32 %v3192_v31, %v2545_v32  ;;  %v3190_v39 = vld [vmem:[%s5175_s1 + $0x294] sm:$0xf] }
  0x63   :  { %839 = vmatmul.bf16.vlgmr.msra.gmra.mxu0 %v3703_v60  ;;  %876 = vmatpush.bf16.msra.mxu3 %v2476_v1  ;;  %v924_v60 = vld [vmem:[%s5177_s3 + $0x68] sm:$0xff]  ;;  %v2612_v38 = vor.u32 %v3208_v33, %v2609_v34  ;;  %v2537_v40 = vld [vmem:[%s5175_s1 + $0x298] sm:$0xf0]  ;;  %v3206_v41 = vld [vmem:[%s5175_s1 + $0x314] sm:$0xf] }
  0x64   :  { %883 = vmatpush.bf16.msrb.mxu0 %v2588_v55  ;;  %852 = vmatmul.bf16.vlgmr.msra.gmra.mxu1 %v3669_v45  ;;  %v3212_v45 = vld [vmem:[%s5175_s1 + $0x344] sm:$0xf]  ;;  %v2601_v42 = vld [vmem:[%s5175_s1 + $0x318] sm:$0xf0]  ;;  %v917_v43 = vld [vmem:[%s5177_s3 + $0x30] sm:$0xff]  ;;  %v2540_v44 = vor.u32 %v3190_v39, %v2537_v40 }
  0x65   :  { %896 = vmatpush.bf16.msrb.mxu1 %v2652_v58  ;;  %865 = vmatmul.bf16.vlgmr.msra.gmra.mxu2 %v3741_v13  ;;  %v2625_v13 = vld [vmem:[%s5175_s1 + $0x348] sm:$0xf0]  ;;  %v2604_v47 = vor.u32 %v3206_v41, %v2601_v42  ;;  %v3188_v48 = vld [vmem:[%s5175_s1 + $0x284] sm:$0xf]  ;;  %v914_v55 = vld [vmem:[%s5177_s3 + $0x18] sm:$0xff] }
  0x66   :  { %947 = vmatpush.msrb.mxu2 %v926_v5  ;;  %v2628_v20 = vor.u32 %v3212_v45, %v2625_v13  ;;  %v916_v46 = vld [vmem:[%s5177_s3 + $0x28] sm:$0xff]  ;;  %v3204_v50 = vld [vmem:[%s5175_s1 + $0x304] sm:$0xf]  ;;  %v913_v57 = vld [vmem:[%s5177_s3 + $0x10] sm:$0xff] }
  0x67   :  { %877 = vmatpush.bf16.msra.mxu3 %v2468_v12  ;;  %v2529_v49 = vld [vmem:[%s5175_s1 + $0x288] sm:$0xf0]  ;;  %v915_v52 = vld [vmem:[%s5177_s3 + $0x20] sm:$0xff]  ;;  %v1019_v58 = vld [vmem:[%s5179_s5 + $0xf0] sm:$0xff] }
  0x68   :  { %884 = vmatpush.bf16.msrb.mxu0 %v2580_v2  ;;  %948 = vmatpush.msrb.mxu2 %v925_v11  ;;  %v2593_v51 = vld [vmem:[%s5175_s1 + $0x308] sm:$0xf0]  ;;  %v2532_v53 = vor.u32 %v3188_v48, %v2529_v49  ;;  %v1017_v61 = vld [vmem:[%s5179_s5 + $0xe0] sm:$0xff]  ;;  %v1015_v63 = vld [vmem:[%s5179_s5 + $0xd0] sm:$0xff] }
  0x69   :  { %897 = vmatpush.bf16.msrb.mxu1 %v2644_v6  ;;  %v2596_v56 = vor.u32 %v3204_v50, %v2593_v51  ;;  %v912_v59 = vld [vmem:[%s5177_s3 + $0x8] sm:$0xff]  ;;  %v911_v62 = vld [vmem:[%s5177_s3] sm:$0xff]  ;;  %v1011_v1 = vld [vmem:[%s5179_s5 + $0xb0] sm:$0xff] }
  0x6a   :  { %949 = vmatpush.msrb.mxu2 %v924_v60  ;;  %878 = vmatmul.bf16.vlgmr.msra.gmra.mxu3 %v3882_v23  ;;  %v2620_v23 = vor.u32 %v3210_v24, %v2617_v26  ;;  %v1018_v0 = vld [vmem:[%s5179_s5 + $0xe8] sm:$0xff]  ;;  %v1016_v2 = vld [vmem:[%s5179_s5 + $0xd8] sm:$0xff]  ;;  %v1009_v3 = vld [vmem:[%s5179_s5 + $0xa0] sm:$0xff] }
  0x6b   :  { %v1014_v4 = vld [vmem:[%s5179_s5 + $0xc8] sm:$0xff]  ;;  %v1007_v5 = vld [vmem:[%s5179_s5 + $0x90] sm:$0xff]  ;;  %v1012_v6 = vld [vmem:[%s5179_s5 + $0xb8] sm:$0xff] }
  0x6c   :  { %885 = vmatpush.bf16.msrb.mxu0 %v2572_v54  ;;  %950 = vmatpush.msrb.mxu2 %v923_v17  ;;  %v1005_v7 = vld [vmem:[%s5179_s5 + $0x80] sm:$0xff]  ;;  %v1010_v8 = vld [vmem:[%s5179_s5 + $0xa8] sm:$0xff]  ;;  %v1003_v9 = vld [vmem:[%s5179_s5 + $0x70] sm:$0xff] }
  0x6d   :  { %898 = vmatpush.bf16.msrb.mxu1 %v2636_v14  ;;  %v1008_v10 = vld [vmem:[%s5179_s5 + $0x98] sm:$0xff]  ;;  %v1001_v11 = vld [vmem:[%s5179_s5 + $0x60] sm:$0xff]  ;;  %v1006_v12 = vld [vmem:[%s5179_s5 + $0x88] sm:$0xff] }
  0x6e   :  { %951 = vmatpush.msrb.mxu2 %v922_v19  ;;  %v999_v54 = vld [vmem:[%s5179_s5 + $0x50] sm:$0xff]  ;;  %v1004_v60 = vld [vmem:[%s5179_s5 + $0x78] sm:$0xff]  ;;  %v997_v16 = vld [vmem:[%s5179_s5 + $0x40] sm:$0xff] }
  0x6f   :  { %v1002_v45 = vld [vmem:[%s5179_s5 + $0x68] sm:$0xff]  ;;  %v995_v13 = vld [vmem:[%s5179_s5 + $0x30] sm:$0xff]  ;;  %v1000_v17 = vld [vmem:[%s5179_s5 + $0x58] sm:$0xff] }
  0x70   :  { %886 = vmatpush.bf16.msrb.mxu0 %v2564_v18  ;;  %952 = vmatpush.msrb.mxu2 %v921_v27  ;;  %v4288_v19 = vld [vmem:[%s5176_s2] sm:$0x3]  ;;  %v998_v21 = vld [vmem:[%s5179_s5 + $0x48] sm:$0xff]  ;;  %v942_v22 = vld [vmem:[%s5177_s3 + $0xf8] sm:$0xff] }
  0x71   :  { %899 = vmatpush.bf16.msrb.mxu1 %v2628_v20  ;;  %v993_v20 = vld [vmem:[%s5179_s5 + $0x20] sm:$0xff]  ;;  %967 = vmatpush.msrb.mxu3 %v942_v22  ;;  %v991_v27 = vld [vmem:[%s5179_s5 + $0x10] sm:$0xff]  ;;  %v994_v32 = vld [vmem:[%s5179_s5 + $0x28] sm:$0xff] }
  0x72   :  { %953 = vmatpush.msrb.mxu2 %v920_v30  ;;  %v941_v30 = vld [vmem:[%s5177_s3 + $0xf0] sm:$0xff]  ;;  %v989_v31 = vld [vmem:[%s5179_s5] sm:$0xff]  ;;  %v940_v33 = vld [vmem:[%s5177_s3 + $0xe8] sm:$0xff] }
  0x73   :  { %968 = vmatpush.msrb.mxu3 %v941_v30  ;;  %v992_v34 = vld [vmem:[%s5179_s5 + $0x18] sm:$0xff]  ;;  %v937_v41 = vld [vmem:[%s5177_s3 + $0xd0] sm:$0xff]  ;;  %v932_v51 = vld [vmem:[%s5177_s3 + $0xa8] sm:$0xff] }
  0x74   :  { %887 = vmatpush.bf16.msrb.mxu0 %v2556_v29  ;;  %954 = vmatpush.msrb.mxu2 %v919_v35  ;;  %v996_v29 = vld [vmem:[%s5179_s5 + $0x38] sm:$0xff]  ;;  %v939_v35 = vld [vmem:[%s5177_s3 + $0xe0] sm:$0xff]  ;;  %v933_v49 = vld [vmem:[%s5177_s3 + $0xb0] sm:$0xff] }
  0x75   :  { %900 = vmatpush.bf16.msrb.mxu1 %v2620_v23  ;;  %v163_v23 = vperm.slane %v4288_v19, 0  ;;  %969 = vmatpush.msrb.mxu3 %v940_v33  ;;  %v938_v40 = vld [vmem:[%s5177_s3 + $0xd8] sm:$0xff]  ;;  %v1038_v22 = vld [vmem:[%s5179_s5 + $0x188] sm:$0xff]  ;;  %v1021_v33 = vld [vmem:[%s5179_s5 + $0x100] sm:$0xff] }
  0x76   :  { %955 = vmatpush.msrb.mxu2 %v918_v37  ;;  %v990_v37 = vld [vmem:[%s5179_s5 + $0x8] sm:$0xff]  ;;  %v934_v48 = vld [vmem:[%s5177_s3 + $0xb8] sm:$0xff] }
  0x77   :  { %970 = vmatpush.msrb.mxu3 %v939_v35  ;;  %v1028_v35 = vld [vmem:[%s5179_s5 + $0x138] sm:$0xff] }
  0x78   :  { %888 = vmatpush.bf16.msrb.mxu0 %v2548_v36  ;;  %956 = vmatpush.msrb.mxu2 %v917_v43  ;;  %v936_v43 = vld [vmem:[%s5177_s3 + $0xc8] sm:$0xff] }
  0x79   :  { %901 = vmatpush.bf16.msrb.mxu1 %v2612_v38  ;;  %971 = vmatpush.msrb.mxu3 %v938_v40 }
  0x7a   :  { %957 = vmatpush.msrb.mxu2 %v916_v46 }
  0x7b   :  { %972 = vmatpush.msrb.mxu3 %v937_v41 }
  0x7c   :  { %889 = vmatpush.bf16.msrb.mxu0 %v2540_v44  ;;  %958 = vmatpush.msrb.mxu2 %v915_v52  ;;  %v935_v44 = vld [vmem:[%s5177_s3 + $0xc0] sm:$0xff]  ;;  %v1051_v52 = vld [vmem:[%s5179_s5 + $0x1f0] sm:$0xff] }
  0x7d   :  { %902 = vmatpush.bf16.msrb.mxu1 %v2604_v47  ;;  %973 = vmatpush.msrb.mxu3 %v936_v43 }
  0x7e   :  { %959 = vmatpush.msrb.mxu2 %v914_v55 }
  0x7f   :  { %974 = vmatpush.msrb.mxu3 %v935_v44  ;;  %v2851_v44 = vld [vmem:[%s5181_s7 + $0x188] sm:$0xf] }
  0x80   :  { %890 = vmatpush.bf16.msrb.mxu0 %v2532_v53  ;;  %960 = vmatpush.msrb.mxu2 %v913_v57  ;;  %v931_v53 = vld [vmem:[%s5177_s3 + $0xa0] sm:$0xff] }
  0x81   :  { %903 = vmatpush.bf16.msrb.mxu1 %v2596_v56  ;;  %975 = vmatpush.msrb.mxu3 %v934_v48  ;;  %v1049_v57 = vld [vmem:[%s5179_s5 + $0x1e0] sm:$0xff] }
  0x82   :  { %961 = vmatpush.msrb.mxu2 %v912_v59 }
  0x83   :  { %891 = vmatmul.bf16.vlgmr.msrb.gmra.mxu0 %v3887_v25  ;;  %v1020_v25 = vld [vmem:[%s5179_s5 + $0xf8] sm:$0xff]  ;;  %976 = vmatpush.msrb.mxu3 %v933_v49 }
  0x84   :  { %1059 = vmatpush.msra.mxu0 %v1019_v58  ;;  %904 = vmatmul.bf16.vlgmr.msrb.gmra.mxu1 %v3895_v28  ;;  %v1013_v28 = vld [vmem:[%s5179_s5 + $0xc0] sm:$0xff]  ;;  %v1047_v58 = vld [vmem:[%s5179_s5 + $0x1d0] sm:$0xff] }
  0x85   :  { %962 = vmatpush.msrb.mxu2 %v911_v62  ;;  %1079 = vmatpush.msra.mxu1 %v1051_v52  ;;  %v1045_v62 = vld [vmem:[%s5179_s5 + $0x1c0] sm:$0xff] }
  0x86   :  { %1060 = vmatpush.msra.mxu0 %v1017_v61  ;;  %977 = vmatpush.msrb.mxu3 %v932_v51  ;;  %v930_v61 = vld [vmem:[%s5177_s3 + $0x98] sm:$0xff] }
  0x87   :  { %1099 = vmatpush.msra.mxu2 %v1020_v25  ;;  %1080 = vmatpush.msra.mxu1 %v1049_v57 }
  0x88   :  { %1061 = vmatpush.msra.mxu0 %v1015_v63  ;;  %978 = vmatpush.msrb.mxu3 %v931_v53  ;;  %v929_v63 = vld [vmem:[%s5177_s3 + $0x90] sm:$0xff] }
  0x89   :  { %1100 = vmatpush.msra.mxu2 %v1018_v0  ;;  %1081 = vmatpush.msra.mxu1 %v1047_v58  ;;  %v1043_v0 = vld [vmem:[%s5179_s5 + $0x1b0] sm:$0xff] }
  0x8a   :  { %1062 = vmatpush.msra.mxu0 %v1013_v28  ;;  %979 = vmatpush.msrb.mxu3 %v930_v61  ;;  %v928_v28 = vld [vmem:[%s5177_s3 + $0x88] sm:$0xff] }
  0x8b   :  { %1101 = vmatpush.msra.mxu2 %v1016_v2  ;;  %1082 = vmatpush.msra.mxu1 %v1045_v62 }
  0x8c   :  { %1063 = vmatpush.msra.mxu0 %v1011_v1  ;;  %980 = vmatpush.msrb.mxu3 %v929_v63  ;;  %v1041_v1 = vld [vmem:[%s5179_s5 + $0x1a0] sm:$0xff]  ;;  %v3269_v63 = vld [vmem:[%s5181_s7 + $0x18c] sm:$0xf] }
  0x8d   :  { %1102 = vmatpush.msra.mxu2 %v1014_v4  ;;  %1083 = vmatpush.msra.mxu1 %v1043_v0  ;;  %v2823_v0 = vld [vmem:[%s5181_s7 + $0x150] sm:$0xf] }
  0x8e   :  { %1064 = vmatpush.msra.mxu0 %v1009_v3  ;;  %v927_v3 = vld [vmem:[%s5177_s3 + $0x80] sm:$0xff]  ;;  %981 = vmatpush.msrb.mxu3 %v928_v28 }
  0x8f   :  { %1103 = vmatpush.msra.mxu2 %v1012_v6  ;;  %1084 = vmatpush.msra.mxu1 %v1041_v1  ;;  %v3265_v1 = vld [vmem:[%s5181_s7 + $0x168] sm:$0xf0] }
  0x90   :  { %1065 = vmatpush.msra.mxu0 %v1007_v5  ;;  %982 = vmatpush.msrb.mxu3 %v927_v3  ;;  %v3262_v3 = vld [vmem:[%s5181_s7 + $0x154] sm:$0xf] }
  0x91   :  { %1104 = vmatpush.msra.mxu2 %v1010_v8  ;;  %v1039_v8 = vld [vmem:[%s5179_s5 + $0x190] sm:$0xff] }
  0x92   :  { %1066 = vmatpush.msra.mxu0 %v1005_v7  ;;  %v1052_v7 = vld [vmem:[%s5179_s5 + $0x1f8] sm:$0xff]  ;;  %1085 = vmatpush.msra.mxu1 %v1039_v8 }
  0x93   :  { %1105 = vmatpush.msra.mxu2 %v1008_v10  ;;  %v1050_v10 = vld [vmem:[%s5179_s5 + $0x1e8] sm:$0xff]  ;;  %1119 = vmatpush.msra.mxu3 %v1052_v7  ;;  %v3258_v7 = vld [vmem:[%s5181_s7 + $0x130] sm:$0xf0]  ;;  %v3255_v8 = vld [vmem:[%s5181_s7 + $0x11c] sm:$0xf] }
  0x94   :  { %1067 = vmatpush.msra.mxu0 %v1003_v9 }
  0x95   :  { %1106 = vmatpush.msra.mxu2 %v1006_v12  ;;  %v1037_v12 = vld [vmem:[%s5179_s5 + $0x180] sm:$0xff]  ;;  %1120 = vmatpush.msra.mxu3 %v1050_v10  ;;  %v2797_v10 = vld [vmem:[%s5181_s7 + $0x134] sm:$0xf0] }
  0x96   :  { %1068 = vmatpush.msra.mxu0 %v1001_v11  ;;  %v1048_v11 = vld [vmem:[%s5179_s5 + $0x1d8] sm:$0xff]  ;;  %1086 = vmatpush.msra.mxu1 %v1037_v12  ;;  %v2767_v12 = vld [vmem:[%s5181_s7 + $0xe0] sm:$0xf] }
  0x97   :  { %1107 = vmatpush.msra.mxu2 %v1004_v60  ;;  %1121 = vmatpush.msra.mxu3 %v1048_v11  ;;  %v2800_v11 = vor.u32 %v3255_v8, %v2797_v10  ;;  %v2965_v8 = vld [vmem:[%s5181_s7 + $0x284] sm:$0xf0] }
  0x98   :  { %1069 = vmatpush.msra.mxu0 %v999_v54  ;;  %v1035_v54 = vld [vmem:[%s5179_s5 + $0x170] sm:$0xff] }
  0x99   :  { %1108 = vmatpush.msra.mxu2 %v1002_v45  ;;  %1087 = vmatpush.msra.mxu1 %v1035_v54  ;;  %v1044_v45 = vld [vmem:[%s5179_s5 + $0x1b8] sm:$0xff] }
  0x9a   :  { %1070 = vmatpush.msra.mxu0 %v997_v16  ;;  %v3251_v54 = vld [vmem:[%s5181_s7 + $0xf8] sm:$0xf0] }
  0x9b   :  { %1109 = vmatpush.msra.mxu2 %v1000_v17  ;;  %v1042_v17 = vld [vmem:[%s5179_s5 + $0x1a8] sm:$0xff] }
  0x9c   :  { %1071 = vmatpush.msra.mxu0 %v995_v13  ;;  %v1031_v13 = vld [vmem:[%s5179_s5 + $0x150] sm:$0xff] }
  0x9d   :  { %1110 = vmatpush.msra.mxu2 %v998_v21 }
  0x9e   :  { %1072 = vmatpush.msra.mxu0 %v993_v20  ;;  %v1040_v20 = vld [vmem:[%s5179_s5 + $0x198] sm:$0xff] }
  0x9f   :  { %1111 = vmatpush.msra.mxu2 %v996_v29  ;;  %v1034_v29 = vld [vmem:[%s5179_s5 + $0x168] sm:$0xff] }
  0xa0   :  { %v736_v14 = vpop.f32.mrf.mxu0  ;;  %1073 = vmatpush.msra.mxu0 %v991_v27  ;;  %v1025_v27 = vld [vmem:[%s5179_s5 + $0x120] sm:$0xff] }
  0xa1   :  { %v749_v15 = vpop.f32.mrf.mxu1  ;;  %1112 = vmatpush.msra.mxu2 %v994_v32  ;;  %v737_v38 = vadd.f32 %v736_v14, %v163_v23  ;;  %v1046_v14 = vld [vmem:[%s5179_s5 + $0x1c8] sm:$0xff]  ;;  %v1032_v32 = vld [vmem:[%s5179_s5 + $0x158] sm:$0xff] }
  0xa2   :  { %1074 = vmatpush.msra.mxu0 %v989_v31  ;;  %1122 = vmatpush.msra.mxu3 %v1046_v14  ;;  %v1023_v31 = vld [vmem:[%s5179_s5 + $0x110] sm:$0xff]  ;;  %v3248_v14 = vld [vmem:[%s5181_s7 + $0xe4] sm:$0xf] }
  0xa3   :  { %1113 = vmatpush.msra.mxu2 %v992_v34  ;;  %v750_v42 = vadd.f32 %v749_v15, %v737_v38  ;;  %v1033_v15 = vld [vmem:[%s5179_s5 + $0x160] sm:$0xff]  ;;  %v1030_v34 = vld [vmem:[%s5179_s5 + $0x148] sm:$0xff]  ;;  %v164_v38 = vperm.slane %v4288_v19, 1 }
  0xa4   :  { %1088 = vmatpush.msra.mxu1 %v1033_v15  ;;  %1123 = vmatpush.msra.mxu3 %v1044_v45  ;;  %v2769_v15 = vld [vmem:[%s5181_s7 + $0xfc] sm:$0xf0]  ;;  %v3075_v45 = vld [vmem:[%s5181_s7 + $0x348] sm:$0xf] }
  0xa5   :  { %1114 = vmatpush.msra.mxu2 %v990_v37  ;;  %v1024_v37 = vld [vmem:[%s5179_s5 + $0x118] sm:$0xff] }
  0xa6   :  { %1089 = vmatpush.msra.mxu1 %v1031_v13  ;;  %1124 = vmatpush.msra.mxu3 %v1042_v17  ;;  %v3328_v13 = vld [vmem:[%s5181_s7 + $0x360] sm:$0xf0] }
  0xa7   :  { %v3076_v17 = vor.u32 %v3328_v13, %v3075_v45  ;;  %v3263_v45 = vld [vmem:[%s5181_s7 + $0x15c] sm:$0xf]  ;;  %v2833_v13 = vld [vmem:[%s5181_s7 + $0x174] sm:$0xf0] }
  0xa8   :  { %v762_v18 = vpop.f32.mrf.mxu2  ;;  %v738_v24 = vpop.f32.mrf.mxu0  ;;  %1125 = vmatpush.msra.mxu3 %v1040_v20  ;;  %v3077_v20 = vld [vmem:[%s5181_s7 + $0x364] sm:$0xf0] }
  0xa9   :  { %v751_v26 = vpop.f32.mrf.mxu1  ;;  %v763_v47 = vadd.f32 %v762_v18, %v750_v42  ;;  %v1029_v18 = vld [vmem:[%s5179_s5 + $0x140] sm:$0xff]  ;;  %v1027_v24 = vld [vmem:[%s5179_s5 + $0x130] sm:$0xff]  ;;  %v1022_v42 = vld [vmem:[%s5179_s5 + $0x108] sm:$0xff] }
  0xaa   :  { %1090 = vmatpush.msra.mxu1 %v1029_v18  ;;  %1126 = vmatpush.msra.mxu3 %v1038_v22  ;;  %v1036_v26 = vld [vmem:[%s5179_s5 + $0x178] sm:$0xff]  ;;  %v3325_v18 = vld [vmem:[%s5181_s7 + $0x34c] sm:$0xf] }
  0xab   :  { %v3080_v22 = vor.u32 %v3325_v18, %v3077_v20  ;;  %v2937_v18 = vld [vmem:[%s5181_s7 + $0x24c] sm:$0xf0] }
  0xac   :  { %1091 = vmatpush.msra.mxu1 %v1027_v24  ;;  %1127 = vmatpush.msra.mxu3 %v1036_v26  ;;  %v3244_v24 = vld [vmem:[%s5181_s7 + $0xc0] sm:$0xf0]  ;;  %v3241_v26 = vld [vmem:[%s5181_s7 + $0xac] sm:$0xf] }
  0xad   :  { %v775_v36 = vpop.f32.mrf.mxu3 }
  0xae   :  { %v776_v50 = vadd.f32 %v775_v36, %v763_v47  ;;  %1092 = vmatpush.msra.mxu1 %v1025_v27  ;;  %1128 = vmatpush.msra.mxu3 %v1034_v29  ;;  %v1026_v36 = vld [vmem:[%s5179_s5 + $0x128] sm:$0xff] }
  0xaf   :  { %v2741_v27 = vld [vmem:[%s5181_s7 + $0xc4] sm:$0xf0] }
  0xb0   :  { %v764_v39 = vpop.f32.mrf.mxu2  ;;  %1093 = vmatpush.msra.mxu1 %v1023_v31  ;;  %1129 = vmatpush.msra.mxu3 %v1032_v32  ;;  %v3321_v31 = vld [vmem:[%s5181_s7 + $0x328] sm:$0xf0]  ;;  %v3318_v32 = vld [vmem:[%s5181_s7 + $0x314] sm:$0xf] }
  0xb2   :  { %1094 = vmatpush.msra.mxu1 %v1021_v33  ;;  %1130 = vmatpush.msra.mxu3 %v1030_v34  ;;  %v3049_v34 = vld [vmem:[%s5181_s7 + $0x32c] sm:$0xf0] }
  0xb4   :  { %1131 = vmatpush.msra.mxu3 %v1028_v35  ;;  %1876 = vmatpush.bf16.msrb.mxu1 %v3076_v17  ;;  %v2711_v35 = vld [vmem:[%s5181_s7 + $0x70] sm:$0xf]  ;;  %v3290_v17 = vld [vmem:[%s5181_s7 + $0x234] sm:$0xf] }
  0xb5   :  { %v777_v46 = vpop.f32.mrf.mxu3 }
  0xb6   :  { %1132 = vmatpush.msra.mxu3 %v1026_v36  ;;  %v3272_v46 = vld [vmem:[%s5181_s7 + $0x1a0] sm:$0xf0]  ;;  %v3237_v36 = vld [vmem:[%s5181_s7 + $0x88] sm:$0xf0] }
  0xb7   :  { %v2852_v19 = vor.u32 %v3272_v46, %v2851_v44  ;;  %v3311_v44 = vld [vmem:[%s5181_s7 + $0x2dc] sm:$0xf]  ;;  %v3021_v46 = vld [vmem:[%s5181_s7 + $0x2f4] sm:$0xf0] }
  0xb8   :  { %1133 = vmatpush.msra.mxu3 %v1024_v37  ;;  %v3052_v37 = vor.u32 %v3318_v32, %v3049_v34  ;;  %v3283_v32 = vld [vmem:[%s5181_s7 + $0x1fc] sm:$0xf] }
  0xb9   :  { %1863 = vmatpush.bf16.msrb.mxu0 %v2852_v19 }
  0xba   :  { %1134 = vmatpush.msra.mxu3 %v1022_v42 }
  0xc0   :  { %v788_v55 = vpop.f32.mrf.mxu0 }
  0xc1   :  { %v801_v56 = vpop.f32.mrf.mxu1  ;;  %v789_v59 = vadd.f32 %v788_v55, %v776_v50 }
  0xc3   :  { %v802_v25 = vadd.f32 %v801_v56, %v789_v59 }
  0xc8   :  { %v814_v2 = vpop.f32.mrf.mxu2  ;;  %v790_v5 = vpop.f32.mrf.mxu0 }
  0xc9   :  { %v815_v4 = vadd.f32 %v814_v2, %v802_v25  ;;  %v803_v6 = vpop.f32.mrf.mxu1  ;;  %v2853_v25 = vld [vmem:[%s5181_s7 + $0x1a4] sm:$0xf0]  ;;  %v2824_v2 = vor.u32 %v3265_v1, %v2823_v0  ;;  %v3273_v0 = vld [vmem:[%s5181_s7 + $0x1a8] sm:$0xf0] }
  0xca   :  { %v2856_v28 = vor.u32 %v3269_v63, %v2853_v25  ;;  %v2795_v6 = vld [vmem:[%s5181_s7 + $0x118] sm:$0xf]  ;;  %v2657_v63 = vld [vmem:[%s5181_s7 + $0x1c] sm:$0xf0]  ;;  %v2963_v1 = vld [vmem:[%s5181_s7 + $0x268] sm:$0xf] }
  0xcb   :  { %v909_v9 = vmax.f32 %v815_v4, 0.0  ;;  %v2825_v4 = vld [vmem:[%s5181_s7 + $0x16c] sm:$0xf0]  ;;  %1864 = vmatpush.bf16.msrb.mxu0 %v2824_v2 }
  0xcc   :  { %v2828_v5 = vor.u32 %v3262_v3, %v2825_v4  ;;  %v3300_v3 = vld [vmem:[%s5181_s7 + $0x280] sm:$0xf0]  ;;  %v3270_v4 = vld [vmem:[%s5181_s7 + $0x194] sm:$0xf] }
  0xcd   :  { %963 = vmatmul.f32.vlgmr.msrb.gmra.mxu2 %v909_v9  ;;  %1075 = vmatmul.f32.vlgmr.msra.gmra.mxu0 %v909_v9  ;;  %v827_v60 = vpop.f32.mrf.mxu3 }
  0xce   :  { %v828_v43 = vadd.f32 %v827_v60, %v164_v38  ;;  %1889 = vmatpush.bf16.msrb.mxu2 %v2856_v28  ;;  %v2768_v60 = vor.u32 %v3251_v54, %v2767_v12  ;;  %v2712_v38 = vor.u32 %v3237_v36, %v2711_v35  ;;  %v2859_v28 = vld [vmem:[%s5181_s7 + $0x190] sm:$0xf]  ;;  %v2831_v54 = vld [vmem:[%s5181_s7 + $0x158] sm:$0xf]  ;;  %v2775_v35 = vld [vmem:[%s5181_s7 + $0xe8] sm:$0xf] }
  0xcf   :  { %v2860_v10 = vor.u32 %v3273_v0, %v2859_v28  ;;  %v3319_v28 = vld [vmem:[%s5181_s7 + $0x31c] sm:$0xf]  ;;  %v3057_v0 = vld [vmem:[%s5181_s7 + $0x334] sm:$0xf0] }
  0xd0   :  { %v816_v16 = vpop.f32.mrf.mxu2 }
  0xd1   :  { %v2772_v16 = vor.u32 %v3248_v14, %v2769_v15  ;;  %v2935_v14 = vld [vmem:[%s5181_s7 + $0x230] sm:$0xf] }
  0xd2   :  { %1890 = vmatpush.bf16.msrb.mxu2 %v2828_v5  ;;  %v2861_v5 = vld [vmem:[%s5181_s7 + $0x1ac] sm:$0xf0] }
  0xd3   :  { %v2864_v12 = vor.u32 %v3270_v4, %v2861_v5  ;;  %v3235_v5 = vld [vmem:[%s5181_s7 + $0x7c] sm:$0xf] }
  0xd5   :  { %1115 = vmatmul.f32.vlgmr.msra.gmra.mxu2 %v909_v9  ;;  %v829_v21 = vpop.f32.mrf.mxu3  ;;  %v2796_v9 = vor.u32 %v3258_v7, %v2795_v6  ;;  %v3297_v7 = vld [vmem:[%s5181_s7 + $0x26c] sm:$0xf] }
  0xd6   :  { %1891 = vmatpush.bf16.msrb.mxu2 %v2800_v11  ;;  %v2739_v21 = vld [vmem:[%s5181_s7 + $0xa8] sm:$0xf]  ;;  %v2964_v11 = vor.u32 %v3300_v3, %v2963_v1  ;;  %v2968_v15 = vor.u32 %v3297_v7, %v2965_v8  ;;  %v3238_v3 = vld [vmem:[%s5181_s7 + $0x90] sm:$0xf0]  ;;  %v3060_v7 = vor.u32 %v3319_v28, %v3057_v0 }
  0xd7   :  { %1865 = vmatpush.bf16.msrb.mxu0 %v2796_v9  ;;  %v2740_v29 = vor.u32 %v3244_v24, %v2739_v21  ;;  %v2803_v24 = vld [vmem:[%s5181_s7 + $0x120] sm:$0xf] }
  0xda   :  { %1892 = vmatpush.bf16.msrb.mxu2 %v2772_v16  ;;  %v3293_v16 = vld [vmem:[%s5181_s7 + $0x248] sm:$0xf0] }
  0xdb   :  { %1866 = vmatpush.bf16.msrb.mxu0 %v2768_v60  ;;  %v3266_v60 = vld [vmem:[%s5181_s7 + $0x170] sm:$0xf0]  ;;  %v2936_v21 = vor.u32 %v3293_v16, %v2935_v14  ;;  %v3231_v16 = vld [vmem:[%s5181_s7 + $0x58] sm:$0xf0] }
  0xdc   :  { %v2832_v20 = vor.u32 %v3266_v60, %v2831_v54  ;;  %v3312_v54 = vld [vmem:[%s5181_s7 + $0x2e4] sm:$0xf]  ;;  %v3029_v60 = vld [vmem:[%s5181_s7 + $0x2fc] sm:$0xf0] }
  0xdd   :  { %v3032_v14 = vor.u32 %v3312_v54, %v3029_v60  ;;  %v3264_v54 = vld [vmem:[%s5181_s7 + $0x164] sm:$0xf]  ;;  %v2841_v60 = vld [vmem:[%s5181_s7 + $0x17c] sm:$0xf0] }
  0xdf   :  { %1867 = vmatpush.bf16.msrb.mxu0 %v2740_v29  ;;  %v2940_v29 = vor.u32 %v3290_v17, %v2937_v18  ;;  %v2693_v17 = vld [vmem:[%s5181_s7 + $0x5c] sm:$0xf0] }
  0xe0   :  { %v840_v30 = vpop.f32.mrf.mxu0 }
  0xe1   :  { %v853_v23 = vpop.f32.mrf.mxu1  ;;  %v841_v48 = vadd.f32 %v840_v30, %v828_v43  ;;  %v2744_v30 = vor.u32 %v3241_v26, %v2741_v27  ;;  %v3314_v43 = vld [vmem:[%s5181_s7 + $0x2f0] sm:$0xf0]  ;;  %v3259_v26 = vld [vmem:[%s5181_s7 + $0x138] sm:$0xf0]  ;;  %v2907_v27 = vld [vmem:[%s5181_s7 + $0x1f8] sm:$0xf] }
  0xe2   :  { %v2804_v34 = vor.u32 %v3259_v26, %v2803_v24  ;;  %v3305_v24 = vld [vmem:[%s5181_s7 + $0x2ac] sm:$0xf]  ;;  %v3001_v26 = vld [vmem:[%s5181_s7 + $0x2c4] sm:$0xf0] }
  0xe3   :  { %v854_v50 = vadd.f32 %v853_v23, %v841_v48  ;;  %v3047_v23 = vld [vmem:[%s5181_s7 + $0x310] sm:$0xf]  ;;  %1893 = vmatpush.bf16.msrb.mxu2 %v2744_v30  ;;  %v3230_v48 = vld [vmem:[%s5181_s7 + $0x50] sm:$0xf0]  ;;  %1868 = vmatpush.bf16.msrb.mxu0 %v2712_v38  ;;  %v3252_v38 = vld [vmem:[%s5181_s7 + $0x100] sm:$0xf0] }
  0xe4   :  { %v3048_v33 = vor.u32 %v3321_v31, %v3047_v23  ;;  %v3286_v30 = vld [vmem:[%s5181_s7 + $0x210] sm:$0xf0]  ;;  %v3256_v23 = vld [vmem:[%s5181_s7 + $0x124] sm:$0xf]  ;;  %v2805_v31 = vld [vmem:[%s5181_s7 + $0x13c] sm:$0xf0] }
  0xe5   :  { %v2908_v36 = vor.u32 %v3286_v30, %v2907_v27  ;;  %v3004_v27 = vor.u32 %v3305_v24, %v3001_v26  ;;  %v3224_v30 = vld [vmem:[%s5181_s7 + $0x20] sm:$0xf0] }
  0xe6   :  { %1877 = vmatpush.bf16.msrb.mxu1 %v3048_v33  ;;  %v2909_v33 = vld [vmem:[%s5181_s7 + $0x214] sm:$0xf0] }
  0xe8   :  { %v842_v39 = vpop.f32.mrf.mxu0  ;;  %v866_v40 = vpop.f32.mrf.mxu2 }
  0xe9   :  { %v855_v41 = vpop.f32.mrf.mxu1  ;;  %v867_v52 = vadd.f32 %v866_v40, %v854_v50  ;;  %v3234_v39 = vld [vmem:[%s5181_s7 + $0x74] sm:$0xf]  ;;  %v2713_v40 = vld [vmem:[%s5181_s7 + $0x8c] sm:$0xf0]  ;;  %v3024_v50 = vor.u32 %v3311_v44, %v3021_v46  ;;  %v3276_v44 = vld [vmem:[%s5181_s7 + $0x1c4] sm:$0xf] }
  0xea   :  { %v3019_v41 = vld [vmem:[%s5181_s7 + $0x2d8] sm:$0xf]  ;;  %v2716_v42 = vor.u32 %v3234_v39, %v2713_v40  ;;  %v2879_v39 = vld [vmem:[%s5181_s7 + $0x1c0] sm:$0xf]  ;;  %v3279_v40 = vld [vmem:[%s5181_s7 + $0x1d8] sm:$0xf0] }
  0xeb   :  { %v3020_v19 = vor.u32 %v3314_v43, %v3019_v41  ;;  %v2912_v41 = vor.u32 %v3283_v32, %v2909_v33  ;;  %v2777_v43 = vld [vmem:[%s5181_s7 + $0x104] sm:$0xf0]  ;;  %v2881_v46 = vld [vmem:[%s5181_s7 + $0x1dc] sm:$0xf0] }
  0xec   :  { %1894 = vmatpush.bf16.msrb.mxu2 %v2716_v42  ;;  %v3249_v42 = vld [vmem:[%s5181_s7 + $0xec] sm:$0xf]  ;;  %v2665_v32 = vld [vmem:[%s5181_s7 + $0x24] sm:$0xf0] }
  0xed   :  { %v879_v47 = vpop.f32.mrf.mxu3  ;;  %1878 = vmatpush.bf16.msrb.mxu1 %v3020_v19  ;;  %v3083_v19 = vld [vmem:[%s5181_s7 + $0x350] sm:$0xf] }
  0xee   :  { %v880_v53 = vadd.f32 %v879_v47, %v867_v52  ;;  %v2683_v47 = vld [vmem:[%s5181_s7 + $0x38] sm:$0xf]  ;;  %v2991_v52 = vld [vmem:[%s5181_s7 + $0x2a0] sm:$0xf] }
  0xf0   :  { %v868_v49 = vpop.f32.mrf.mxu2 }
  0xf1   :  { %v3227_v49 = vld [vmem:[%s5181_s7 + $0x3c] sm:$0xf] }
  0xf5   :  { %v881_v51 = vpop.f32.mrf.mxu3 }
  0xf6   :  { %v2685_v51 = vld [vmem:[%s5181_s7 + $0x54] sm:$0xf0] }
 0x100   :  { %v892_v55 = vpop.f32.mrf.mxu0 }
 0x101   :  { %v893_v56 = vadd.f32 %v892_v55, %v880_v53  ;;  %v905_v57 = vpop.f32.mrf.mxu1  ;;  %v3307_v53 = vld [vmem:[%s5181_s7 + $0x2b8] sm:$0xf0]  ;;  %v2684_v55 = vor.u32 %v3230_v48, %v2683_v47  ;;  %v3329_v47 = vld [vmem:[%s5181_s7 + $0x368] sm:$0xf0]  ;;  %v2776_v48 = vor.u32 %v3252_v38, %v2775_v35  ;;  %v2973_v38 = vld [vmem:[%s5181_s7 + $0x28c] sm:$0xf0] }
 0x102   :  { %v2992_v25 = vor.u32 %v3307_v53, %v2991_v52  ;;  %v2780_v52 = vor.u32 %v3249_v42, %v2777_v43  ;;  %v2747_v53 = vld [vmem:[%s5181_s7 + $0xb0] sm:$0xf]  ;;  %v3301_v35 = vld [vmem:[%s5181_s7 + $0x288] sm:$0xf0]  ;;  %v3291_v43 = vld [vmem:[%s5181_s7 + $0x23c] sm:$0xf] }
 0x103   :  { %v906_v58 = vadd.f32 %v905_v57, %v893_v56  ;;  %v3304_v56 = vld [vmem:[%s5181_s7 + $0x2a4] sm:$0xf]  ;;  %v2993_v57 = vld [vmem:[%s5181_s7 + $0x2bc] sm:$0xf0]  ;;  %1869 = vmatpush.bf16.msrb.mxu0 %v2684_v55  ;;  %v3245_v55 = vld [vmem:[%s5181_s7 + $0xc8] sm:$0xf0] }
 0x104   :  { %v2996_v2 = vor.u32 %v3304_v56, %v2993_v57  ;;  %1879 = vmatpush.bf16.msrb.mxu1 %v2992_v25  ;;  %v2884_v56 = vor.u32 %v3276_v44, %v2881_v46  ;;  %v3084_v57 = vor.u32 %v3329_v47, %v3083_v19  ;;  %v2748_v25 = vor.u32 %v3245_v55, %v2747_v53  ;;  %v2945_v44 = vld [vmem:[%s5181_s7 + $0x254] sm:$0xf0]  ;;  %v2915_v19 = vld [vmem:[%s5181_s7 + $0x200] sm:$0xf]  ;;  %v3287_v47 = vld [vmem:[%s5181_s7 + $0x218] sm:$0xf0] }
 0x105   :  { %v910_v59 = vmax.f32 %v906_v58, 0.0  ;;  %v2655_v58 = vld [vmem:[%s5181_s7] sm:$0xf]  ;;  %v2948_v46 = vor.u32 %v3291_v43, %v2945_v44  ;;  %v3280_v53 = vld [vmem:[%s5181_s7 + $0x1e0] sm:$0xf0] }
 0x106   :  { %v3243_v43 = vld [vmem:[%s5181_s7 + $0xbc] sm:$0xf]  ;;  %v2757_v44 = vld [vmem:[%s5181_s7 + $0xd4] sm:$0xf0] }
 0x107   :  { %983 = vmatmul.f32.vlgmr.msrb.gmra.mxu3 %v910_v59  ;;  %1095 = vmatmul.f32.vlgmr.msra.gmra.mxu1 %v910_v59 }
 0x108   :  { %v894_v61 = vpop.f32.mrf.mxu0  ;;  %1902 = vmatpush.bf16.msrb.mxu3 %v3080_v22  ;;  %1880 = vmatpush.bf16.msrb.mxu1 %v2964_v11  ;;  %v2836_v22 = vor.u32 %v3263_v45, %v2833_v13  ;;  %v3315_v11 = vld [vmem:[%s5181_s7 + $0x2f8] sm:$0xf0]  ;;  %v3228_v13 = vld [vmem:[%s5181_s7 + $0x44] sm:$0xf] }
 0x109   :  { %v907_v62 = vpop.f32.mrf.mxu1  ;;  %v3223_v61 = vld [vmem:[%s5181_s7 + $0x18] sm:$0xf0]  ;;  %v2696_v18 = vor.u32 %v3228_v13, %v2693_v17  ;;  %v2811_v13 = vld [vmem:[%s5181_s7 + $0x128] sm:$0xf]  ;;  %v3260_v17 = vld [vmem:[%s5181_s7 + $0x140] sm:$0xf0] }
 0x10a   :  { %v3220_v62 = vld [vmem:[%s5181_s7 + $0x4] sm:$0xf]  ;;  %v2656_v6 = vor.u32 %v3223_v61, %v2655_v58  ;;  %v3242_v58 = vld [vmem:[%s5181_s7 + $0xb4] sm:$0xf]  ;;  %v2812_v24 = vor.u32 %v3260_v17, %v2811_v13 }
 0x10b   :  { %v2660_v9 = vor.u32 %v3220_v62, %v2657_v63  ;;  %v3055_v62 = vld [vmem:[%s5181_s7 + $0x318] sm:$0xf]  ;;  %v3322_v63 = vld [vmem:[%s5181_s7 + $0x330] sm:$0xf0] }
 0x10c   :  { %1903 = vmatpush.bf16.msrb.mxu3 %v3052_v37  ;;  %1870 = vmatpush.bf16.msrb.mxu0 %v2656_v6  ;;  %v2808_v37 = vor.u32 %v3256_v23, %v2805_v31  ;;  %v3056_v4 = vor.u32 %v3322_v63, %v3055_v62  ;;  %v2721_v6 = vld [vmem:[%s5181_s7 + $0x94] sm:$0xf0]  ;;  %v3221_v31 = vld [vmem:[%s5181_s7 + $0xc] sm:$0xf] }
 0x10d   :  { %1881 = vmatpush.bf16.msrb.mxu1 %v2936_v21  ;;  %v3308_v21 = vld [vmem:[%s5181_s7 + $0x2c0] sm:$0xf0]  ;;  %v2668_v33 = vor.u32 %v3221_v31, %v2665_v32  ;;  %v2785_v31 = vld [vmem:[%s5181_s7 + $0x10c] sm:$0xf0] }
 0x10f   :  { %1135 = vmatmul.f32.vlgmr.msra.gmra.mxu3 %v910_v59  ;;  %v2688_v59 = vor.u32 %v3227_v49, %v2685_v51  ;;  %v3326_v49 = vld [vmem:[%s5181_s7 + $0x354] sm:$0xf]  ;;  %v2880_v51 = vor.u32 %v3279_v40, %v2879_v39  ;;  %v2943_v40 = vld [vmem:[%s5181_s7 + $0x238] sm:$0xf] }
 0x110   :  { %1904 = vmatpush.bf16.msrb.mxu3 %v3024_v50  ;;  %1915 = vmatpush.bf16.msra.mxu0 %v2860_v10  ;;  %v3085_v50 = vld [vmem:[%s5181_s7 + $0x36c] sm:$0xf0]  ;;  %v3027_v10 = vld [vmem:[%s5181_s7 + $0x2e0] sm:$0xf] }
 0x111   :  { %1895 = vmatpush.bf16.msrb.mxu2 %v2688_v59  ;;  %1882 = vmatpush.bf16.msrb.mxu1 %v2908_v36  ;;  %v2749_v59 = vld [vmem:[%s5181_s7 + $0xcc] sm:$0xf0]  ;;  %v3088_v61 = vor.u32 %v3326_v49, %v3085_v50  ;;  %v3284_v49 = vld [vmem:[%s5181_s7 + $0x204] sm:$0xf]  ;;  %v2917_v50 = vld [vmem:[%s5181_s7 + $0x21c] sm:$0xf0] }
 0x112   :  { %v2752_v1 = vor.u32 %v3242_v58, %v2749_v59  ;;  %v1053_v59 = vld [vmem:[%s5180_s6] sm:$0x3] }
 0x114   :  { %1905 = vmatpush.bf16.msrb.mxu3 %v2996_v2  ;;  %1916 = vmatpush.bf16.msra.mxu0 %v2832_v20  ;;  %v2719_v2 = vld [vmem:[%s5181_s7 + $0x78] sm:$0xf]  ;;  %v2999_v20 = vld [vmem:[%s5181_s7 + $0x2a8] sm:$0xf] }
 0x115   :  { %1896 = vmatpush.bf16.msrb.mxu2 %v2660_v9  ;;  %1883 = vmatpush.bf16.msrb.mxu1 %v2880_v51  ;;  %v2720_v8 = vor.u32 %v3238_v3, %v2719_v2  ;;  %v2724_v9 = vor.u32 %v3235_v5, %v2721_v6  ;;  %v2920_v51 = vor.u32 %v3284_v49, %v2917_v50  ;;  %v3274_v3 = vld [vmem:[%s5181_s7 + $0x1b0] sm:$0xf0]  ;;  %v2869_v5 = vld [vmem:[%s5181_s7 + $0x1b4] sm:$0xf0]  ;;  %v3323_v49 = vld [vmem:[%s5181_s7 + $0x338] sm:$0xf0] }
 0x116   :  { %v3320_v50 = vld [vmem:[%s5181_s7 + $0x324] sm:$0xf] }
 0x118   :  { %1906 = vmatpush.bf16.msrb.mxu3 %v2968_v15  ;;  %1917 = vmatpush.bf16.msra.mxu0 %v2804_v34  ;;  %v2691_v15 = vld [vmem:[%s5181_s7 + $0x40] sm:$0xf]  ;;  %v2971_v34 = vld [vmem:[%s5181_s7 + $0x270] sm:$0xf] }
 0x119   :  { %1941 = vmatpush.bf16.msra.mxu2 %v2864_v12  ;;  %1928 = vmatpush.bf16.msra.mxu1 %v3084_v57  ;;  %v3028_v12 = vor.u32 %v3315_v11, %v3027_v10  ;;  %v2692_v45 = vor.u32 %v3231_v16, %v2691_v15  ;;  %v2972_v36 = vor.u32 %v3301_v35, %v2971_v34  ;;  %v2889_v57 = vld [vmem:[%s5181_s7 + $0x1e4] sm:$0xf0]  ;;  %v3330_v35 = vld [vmem:[%s5181_s7 + $0x370] sm:$0xf0] }
 0x11c   :  { %1907 = vmatpush.bf16.msrb.mxu3 %v2940_v29  ;;  %1918 = vmatpush.bf16.msra.mxu0 %v2776_v48  ;;  %v2663_v29 = vld [vmem:[%s5181_s7 + $0x8] sm:$0xf]  ;;  %v2916_v48 = vor.u32 %v3287_v47, %v2915_v19  ;;  %v3063_v47 = vld [vmem:[%s5181_s7 + $0x320] sm:$0xf] }
 0x11d   :  { %1942 = vmatpush.bf16.msra.mxu2 %v2836_v22  ;;  %1929 = vmatpush.bf16.msra.mxu1 %v3056_v4  ;;  %v3000_v22 = vor.u32 %v3308_v21, %v2999_v20  ;;  %v2664_v23 = vor.u32 %v3224_v30, %v2663_v29  ;;  %v3271_v4 = vld [vmem:[%s5181_s7 + $0x19c] sm:$0xf]  ;;  %v3257_v20 = vld [vmem:[%s5181_s7 + $0x12c] sm:$0xf]  ;;  %v2813_v21 = vld [vmem:[%s5181_s7 + $0x144] sm:$0xf0] }
 0x11e   :  { %v2816_v26 = vor.u32 %v3257_v20, %v2813_v21  ;;  %v3253_v30 = vld [vmem:[%s5181_s7 + $0x108] sm:$0xf0]  ;;  %v3275_v20 = vld [vmem:[%s5181_s7 + $0x1b8] sm:$0xf0]  ;;  %v2979_v21 = vld [vmem:[%s5181_s7 + $0x278] sm:$0xf] }
 0x120   :  { %1908 = vmatpush.bf16.msrb.mxu3 %v2912_v41  ;;  %1919 = vmatpush.bf16.msra.mxu0 %v2748_v25  ;;  %v3294_v41 = vld [vmem:[%s5181_s7 + $0x250] sm:$0xf0]  ;;  %v3333_v25 = vld [vmem:[%s5178_s4] ss:$0 sm:$0xff] }
 0x121   :  { %1943 = vmatpush.bf16.msra.mxu2 %v2808_v37  ;;  %1930 = vmatpush.bf16.msra.mxu1 %v3028_v12  ;;  %v3298_v37 = vld [vmem:[%s5181_s7 + $0x274] sm:$0xf]  ;;  %v2944_v42 = vor.u32 %v3294_v41, %v2943_v40  ;;  %v3267_v12 = vld [vmem:[%s5181_s7 + $0x178] sm:$0xf0]  ;;  %v2755_v40 = vld [vmem:[%s5181_s7 + $0xb8] sm:$0xf] }
 0x122   :  { %v2976_v39 = vor.u32 %v3298_v37, %v2973_v38  ;;  %v3093_v37 = vld [vmem:[%s5181_s7 + $0x374] sm:$0xf0]  ;;  %v3246_v41 = vld [vmem:[%s5181_s7 + $0xd0] sm:$0xf0] }
 0x124   :  { %1909 = vmatpush.bf16.msrb.mxu3 %v2884_v56  ;;  %1920 = vmatpush.bf16.msra.mxu0 %v2720_v8  ;;  %v3277_v56 = vld [vmem:[%s5181_s7 + $0x1cc] sm:$0xf]  ;;  %v2872_v8 = vor.u32 %v3271_v4, %v2869_v5  ;;  %v2701_v5 = vld [vmem:[%s5181_s7 + $0x64] sm:$0xf0] }
 0x125   :  { %1944 = vmatpush.bf16.msra.mxu2 %v2780_v52  ;;  %1931 = vmatpush.bf16.msra.mxu1 %v3000_v22  ;;  %v2887_v52 = vld [vmem:[%s5181_s7 + $0x1c8] sm:$0xf]  ;;  %v2892_v58 = vor.u32 %v3277_v56, %v2889_v57  ;;  %v3239_v56 = vld [vmem:[%s5181_s7 + $0x98] sm:$0xf0]  ;;  %v3236_v57 = vld [vmem:[%s5181_s7 + $0x84] sm:$0xf] }
 0x126   :  { %v2888_v55 = vor.u32 %v3280_v53, %v2887_v52  ;;  %v2756_v52 = vor.u32 %v3246_v41, %v2755_v40  ;;  %v2760_v53 = vor.u32 %v3243_v43, %v2757_v44  ;;  %v3229_v4 = vld [vmem:[%s5181_s7 + $0x4c] sm:$0xf]  ;;  %v2819_v40 = vld [vmem:[%s5181_s7 + $0x130] sm:$0xf]  ;;  %v2923_v43 = vld [vmem:[%s5181_s7 + $0x208] sm:$0xf] }
 0x127   :  { %v3261_v41 = vld [vmem:[%s5181_s7 + $0x148] sm:$0xf0]  ;;  %v3288_v44 = vld [vmem:[%s5181_s7 + $0x220] sm:$0xf0] }
 0x128   :  { %1954 = vmatpush.bf16.msra.mxu3 %v3088_v61  ;;  %1921 = vmatpush.bf16.msra.mxu0 %v2692_v45  ;;  %v1055_v61 = vperm.slane %v1053_v59, 0  ;;  %v2844_v45 = vor.u32 %v3264_v54, %v2841_v60  ;;  %v2704_v60 = vor.u32 %v3229_v4, %v2701_v5  ;;  %v2735_v4 = vld [vmem:[%s5181_s7 + $0x88] sm:$0xf]  ;;  %v3240_v5 = vld [vmem:[%s5181_s7 + $0xa0] sm:$0xf0] }
 0x129   :  { %1945 = vmatpush.bf16.msra.mxu2 %v2752_v1  ;;  %1932 = vmatpush.bf16.msra.mxu1 %v2972_v36  ;;  %v2867_v1 = vld [vmem:[%s5181_s7 + $0x198] sm:$0xf]  ;;  %v3327_v36 = vld [vmem:[%s5181_s7 + $0x35c] sm:$0xf] }
 0x12a   :  { %v3096_v19 = vor.u32 %v3327_v36, %v3093_v37  ;;  %v3292_v36 = vld [vmem:[%s5181_s7 + $0x244] sm:$0xf]  ;;  %v2953_v37 = vld [vmem:[%s5181_s7 + $0x25c] sm:$0xf0] }
 0x12c   :  { %1955 = vmatpush.bf16.msra.mxu3 %v3060_v7  ;;  %1922 = vmatpush.bf16.msra.mxu0 %v2664_v23  ;;  %v2868_v7 = vor.u32 %v3274_v3, %v2867_v1  ;;  %v3250_v23 = vld [vmem:[%s5181_s7 + $0xf4] sm:$0xf]  ;;  %v3232_v3 = vld [vmem:[%s5181_s7 + $0x60] sm:$0xf0] }
 0x12d   :  { %1946 = vmatpush.bf16.msra.mxu2 %v2724_v9  ;;  %1933 = vmatpush.bf16.msra.mxu1 %v2944_v42  ;;  %v2839_v9 = vld [vmem:[%s5181_s7 + $0x160] sm:$0xf] }
 0x12e   :  { %v2840_v16 = vor.u32 %v3267_v12, %v2839_v9  ;;  %v3309_v9 = vld [vmem:[%s5181_s7 + $0x2c8] sm:$0xf0]  ;;  %v3009_v12 = vld [vmem:[%s5181_s7 + $0x2cc] sm:$0xf0] }
 0x130   :  { %1956 = vmatpush.bf16.msra.mxu3 %v3032_v14 }
 0x131   :  { %1947 = vmatpush.bf16.msra.mxu2 %v2696_v18  ;;  %1934 = vmatpush.bf16.msra.mxu1 %v2916_v48  ;;  %v1056_v18 = vperm.slane %v1053_v59, 1  ;;  %v3064_v59 = vor.u32 %v3323_v49, %v3063_v47  ;;  %v2820_v47 = vor.u32 %v3261_v41, %v2819_v40  ;;  %v2924_v49 = vor.u32 %v3288_v44, %v2923_v43 }
 0x134   :  { %1957 = vmatpush.bf16.msra.mxu3 %v3004_v27  ;;  %v2783_v27 = vld [vmem:[%s5181_s7 + $0xf0] sm:$0xf] }
 0x135   :  { %1948 = vmatpush.bf16.msra.mxu2 %v2668_v33  ;;  %1935 = vmatpush.bf16.msra.mxu1 %v2888_v55  ;;  %v3091_v33 = vld [vmem:[%s5181_s7 + $0x358] sm:$0xf]  ;;  %v2784_v38 = vor.u32 %v3253_v30, %v2783_v27  ;;  %v2727_v55 = vld [vmem:[%s5181_s7 + $0x80] sm:$0xf]  ;;  %v3299_v27 = vld [vmem:[%s5181_s7 + $0x27c] sm:$0xf] }
 0x138   :  { %1958 = vmatpush.bf16.msra.mxu3 %v2976_v39  ;;  %v2788_v39 = vor.u32 %v3250_v23, %v2785_v31  ;;  %v2847_v31 = vld [vmem:[%s5181_s7 + $0x168] sm:$0xf] }
 0x13c   :  { %1959 = vmatpush.bf16.msra.mxu3 %v2948_v46  ;;  %v3092_v46 = vor.u32 %v3330_v35, %v3091_v33  ;;  %v3295_v35 = vld [vmem:[%s5181_s7 + $0x258] sm:$0xf0] }
 0x140   :  { %1960 = vmatpush.bf16.msra.mxu3 %v2920_v51  ;;  %v3065_v51 = vld [vmem:[%s5181_s7 + $0x33c] sm:$0xf0] }
 0x144   :  { %1961 = vmatpush.bf16.msra.mxu3 %v2892_v58  ;;  %v2729_v58 = vld [vmem:[%s5181_s7 + $0x9c] sm:$0xf0] }
 0x145   :  { %v2732_v1 = vor.u32 %v3236_v57, %v2729_v58  ;;  %v2897_v57 = vld [vmem:[%s5181_s7 + $0x1ec] sm:$0xf0]  ;;  %v3099_v58 = vld [vmem:[%s5181_s7 + $0x360] sm:$0xf] }
 0x14a   :  { %v1076_v62 = vpop.f32.mrf.mxu0 }
 0x14b   :  { %v1077_v63 = vadd.f32 %v1076_v62, %v1055_v61  ;;  %v3068_v61 = vor.u32 %v3320_v50, %v3065_v51  ;;  %v3035_v62 = vld [vmem:[%s5181_s7 + $0x2e8] sm:$0xf]  ;;  %v2791_v50 = vld [vmem:[%s5181_s7 + $0xf8] sm:$0xf]  ;;  %v3254_v51 = vld [vmem:[%s5181_s7 + $0x110] sm:$0xf0] }
 0x150   :  { %v964_v28 = vpop.f32.mrf.mxu2 }
 0x151   :  { %v965_v10 = vadd.f32 %v3333_v25, %v964_v28  ;;  %v3313_v25 = vld [vmem:[%s5181_s7 + $0x2ec] sm:$0xf]  ;;  %v3037_v28 = vld [vmem:[%s5181_s7 + $0x304] sm:$0xf0] }
 0x158   :  { %v1116_v22 = vpop.f32.mrf.mxu2 }
 0x159   :  { %v1117_v29 = vadd.f32 %v1116_v22, %v1056_v18  ;;  %v2875_v18 = vld [vmem:[%s5181_s7 + $0x1a0] sm:$0xf]  ;;  %v3302_v22 = vld [vmem:[%s5181_s7 + $0x290] sm:$0xf0] }
 0x15a   :  { %v2876_v30 = vor.u32 %v3275_v20, %v2875_v18  ;;  %v2980_v23 = vor.u32 %v3302_v22, %v2979_v21  ;;  %v3303_v18 = vld [vmem:[%s5181_s7 + $0x298] sm:$0xf0]  ;;  %v2959_v22 = vld [vmem:[%s5181_s7 + $0x248] sm:$0xf] }
 0x184   :  { %v1096_v0 = vpop.f32.mrf.mxu1 }
 0x185   :  { %v1097_v2 = vadd.f32 %v1096_v0, %v1077_v63  ;;  %v3316_v63 = vld [vmem:[%s5181_s7 + $0x300] sm:$0xf0]  ;;  %v2728_v0 = vor.u32 %v3239_v56, %v2727_v55  ;;  %v3281_v55 = vld [vmem:[%s5181_s7 + $0x1e8] sm:$0xf0]  ;;  %v3278_v56 = vld [vmem:[%s5181_s7 + $0x1d4] sm:$0xf] }
 0x187   :  { %v1139_v6 = vmax.f32 %v1097_v2, 0.0  ;;  %v2699_v2 = vld [vmem:[%s5181_s7 + $0x48] sm:$0xf] }
 0x188   :  { %v2700_v54 = vor.u32 %v3232_v3, %v2699_v2  ;;  %v3324_v2 = vld [vmem:[%s5181_s7 + $0x340] sm:$0xf0] }
 0x189   :  { %v4865_v11 = vpack.c.bf16 %v1139_v6, %v1139_v6  ;;  %v3036_v6 = vor.u32 %v3316_v63, %v3035_v62  ;;  %v2763_v63 = vld [vmem:[%s5181_s7 + $0xc0] sm:$0xf] }
 0x18a   :  { %v984_v14 = vpop.f32.mrf.mxu3 }
 0x18b   :  { %v985_v15 = vadd.f32 %v984_v14, %v965_v10  ;;  %1871 = vmatmul.bf16.vlgmr.msrb.gmra.mxu0 %v4865_v11  ;;  %1897 = vmatmul.bf16.vlgmr.msrb.gmra.mxu2 %v4865_v11  ;;  %v3306_v10 = vld [vmem:[%s5181_s7 + $0x2b4] sm:$0xf]  ;;  %v2671_v14 = vld [vmem:[%s5181_s7 + $0x10] sm:$0xf] }
 0x18c   :  { %1967 = vmatpush.bf16.msrb.mxu0 %v2868_v7  ;;  %1993 = vmatpush.bf16.msrb.mxu2 %v2872_v8  ;;  %v3040_v7 = vor.u32 %v3313_v25, %v3037_v28  ;;  %v3007_v8 = vld [vmem:[%s5181_s7 + $0x2b0] sm:$0xf]  ;;  %v3012_v17 = vor.u32 %v3306_v10, %v3009_v12  ;;  %v3247_v25 = vld [vmem:[%s5181_s7 + $0xd8] sm:$0xf0]  ;;  %v2900_v28 = vor.u32 %v3278_v56, %v2897_v57  ;;  %v3233_v12 = vld [vmem:[%s5181_s7 + $0x68] sm:$0xf0] }
 0x18d   :  { %988 = vst.msk [vmem:[%s5184_s10] sm:$0xff] %vm987_vm0, %v985_v15  ;;  %v3225_v15 = vld [vmem:[%s5181_s7 + $0x28] sm:$0xf0]  ;;  %v3008_v13 = vor.u32 %v3309_v9, %v3007_v8  ;;  %v2764_v3 = vor.u32 %v3247_v25, %v2763_v63  ;;  %v2736_v9 = vor.u32 %v3240_v5, %v2735_v4  ;;  %v2707_v10 = vld [vmem:[%s5181_s7 + $0x50] sm:$0xf] }
 0x18e   :  { %v3317_v8 = vld [vmem:[%s5181_s7 + $0x308] sm:$0xf0] }
 0x190   :  { %1968 = vmatpush.bf16.msrb.mxu0 %v2840_v16  ;;  %1994 = vmatpush.bf16.msrb.mxu2 %v2844_v45  ;;  %v3222_v16 = vld [vmem:[%s5181_s7 + $0x14] sm:$0xf]  ;;  %v2673_v45 = vld [vmem:[%s5181_s7 + $0x2c] sm:$0xf0] }
 0x192   :  { %v1136_v32 = vpop.f32.mrf.mxu3 }
 0x193   :  { %v1137_v34 = vadd.f32 %v1136_v32, %v1117_v29  ;;  %v2981_v29 = vld [vmem:[%s5181_s7 + $0x294] sm:$0xf0]  ;;  %v3268_v32 = vld [vmem:[%s5181_s7 + $0x180] sm:$0xf0] }
 0x194   :  { %1969 = vmatpush.bf16.msrb.mxu0 %v2812_v24  ;;  %1995 = vmatpush.bf16.msrb.mxu2 %v2816_v26  ;;  %v2672_v24 = vor.u32 %v3225_v15, %v2671_v14  ;;  %v2676_v26 = vor.u32 %v3222_v16, %v2673_v45  ;;  %v2984_v33 = vor.u32 %v3299_v27, %v2981_v29  ;;  %v3310_v14 = vld [vmem:[%s5181_s7 + $0x2d0] sm:$0xf0]  ;;  %v2679_v16 = vld [vmem:[%s5181_s7 + $0x18] sm:$0xf]  ;;  %v2931_v27 = vld [vmem:[%s5181_s7 + $0x210] sm:$0xf] }
 0x195   :  { %v1140_v42 = vmax.f32 %v1137_v34, 0.0  ;;  %v2951_v34 = vld [vmem:[%s5181_s7 + $0x240] sm:$0xf]  ;;  %v2708_v15 = vor.u32 %v3233_v12, %v2707_v10  ;;  %v3226_v45 = vld [vmem:[%s5181_s7 + $0x30] sm:$0xf0] }
 0x196   :  { %v2680_v20 = vor.u32 %v3226_v45, %v2679_v16  ;;  %v3289_v29 = vld [vmem:[%s5181_s7 + $0x228] sm:$0xf0] }
 0x197   :  { %v4932_v48 = vpack.c.bf16 %v1140_v42, %v1140_v42  ;;  %v2956_v42 = vor.u32 %v3292_v36, %v2953_v37 }
 0x198   :  { %1970 = vmatpush.bf16.msrb.mxu0 %v2784_v38  ;;  %1996 = vmatpush.bf16.msrb.mxu2 %v2788_v39  ;;  %v2848_v38 = vor.u32 %v3268_v32, %v2847_v31  ;;  %v2952_v39 = vor.u32 %v3295_v35, %v2951_v34  ;;  %v3282_v31 = vld [vmem:[%s5181_s7 + $0x1f0] sm:$0xf0] }
 0x199   :  { %1884 = vmatmul.bf16.vlgmr.msrb.gmra.mxu1 %v4932_v48  ;;  %1910 = vmatmul.bf16.vlgmr.msrb.gmra.mxu3 %v4932_v48 }
 0x19a   :  { %1980 = vmatpush.bf16.msrb.mxu1 %v3092_v46  ;;  %2006 = vmatpush.bf16.msrb.mxu3 %v3096_v19  ;;  %v3285_v46 = vld [vmem:[%s5181_s7 + $0x20c] sm:$0xf]  ;;  %v2925_v19 = vld [vmem:[%s5181_s7 + $0x224] sm:$0xf0] }
 0x19b   :  { %1923 = vmatmul.bf16.vlgmr.msra.gmra.mxu0 %v4865_v11  ;;  %1949 = vmatmul.bf16.vlgmr.msra.gmra.mxu2 %v4865_v11 }
 0x19c   :  { %1971 = vmatpush.bf16.msrb.mxu0 %v2756_v52  ;;  %1997 = vmatpush.bf16.msrb.mxu2 %v2760_v53  ;;  %v2928_v52 = vor.u32 %v3285_v46, %v2925_v19  ;;  %v2895_v53 = vld [vmem:[%s5181_s7 + $0x1d0] sm:$0xf] }
 0x19d   :  { %v2896_v62 = vor.u32 %v3281_v55, %v2895_v53 }
 0x19e   :  { %1981 = vmatpush.bf16.msrb.mxu1 %v3064_v59  ;;  %2007 = vmatpush.bf16.msrb.mxu3 %v3068_v61  ;;  %v3331_v59 = vld [vmem:[%s5181_s7 + $0x378] sm:$0xf0]  ;;  %v2792_v61 = vor.u32 %v3254_v51, %v2791_v50 }
 0x1a0   :  { %1972 = vmatpush.bf16.msrb.mxu0 %v2728_v0  ;;  %1998 = vmatpush.bf16.msrb.mxu2 %v2732_v1  ;;  %v3100_v0 = vor.u32 %v3331_v59, %v3099_v58  ;;  %v3071_v1 = vld [vmem:[%s5181_s7 + $0x328] sm:$0xf] }
 0x1a2   :  { %1982 = vmatpush.bf16.msrb.mxu1 %v3036_v6  ;;  %2008 = vmatpush.bf16.msrb.mxu3 %v3040_v7  ;;  %v3072_v6 = vor.u32 %v3324_v2, %v3071_v1  ;;  %v3043_v7 = vld [vmem:[%s5181_s7 + $0x2f0] sm:$0xf] }
 0x1a4   :  { %1973 = vmatpush.bf16.msrb.mxu0 %v2700_v54  ;;  %1999 = vmatpush.bf16.msrb.mxu2 %v2704_v60  ;;  %v3044_v54 = vor.u32 %v3317_v8, %v3043_v7  ;;  %v3015_v60 = vld [vmem:[%s5181_s7 + $0x2b8] sm:$0xf] }
 0x1a6   :  { %1983 = vmatpush.bf16.msrb.mxu1 %v3008_v13  ;;  %2009 = vmatpush.bf16.msrb.mxu3 %v3012_v17  ;;  %v3016_v13 = vor.u32 %v3310_v14, %v3015_v60  ;;  %v2987_v17 = vld [vmem:[%s5181_s7 + $0x280] sm:$0xf] }
 0x1a7   :  { %v2988_v21 = vor.u32 %v3303_v18, %v2987_v17 }
 0x1a8   :  { %1974 = vmatpush.bf16.msrb.mxu0 %v2672_v24  ;;  %2000 = vmatpush.bf16.msrb.mxu2 %v2676_v26  ;;  %v3296_v24 = vld [vmem:[%s5181_s7 + $0x260] sm:$0xf0] }
 0x1a9   :  { %1936 = vmatmul.bf16.vlgmr.msra.gmra.mxu1 %v4932_v48  ;;  %1962 = vmatmul.bf16.vlgmr.msra.gmra.mxu3 %v4932_v48  ;;  %v2960_v26 = vor.u32 %v3296_v24, %v2959_v22 }
 0x1aa   :  { %1984 = vmatpush.bf16.msrb.mxu1 %v2980_v23  ;;  %2010 = vmatpush.bf16.msrb.mxu3 %v2984_v33  ;;  %v2903_v23 = vld [vmem:[%s5181_s7 + $0x1d8] sm:$0xf]  ;;  %v5162_v33 = vld [vmem:[%s5182_s8] sm:$0xff]  ;;  %s3388_s7 = smov [#allocation2]  }
 0x1ab   :  { %1975 = vmatmul.bf16.vlgmr.msrb.gmra.mxu0 %v4865_v11  ;;  %2001 = vmatmul.bf16.vlgmr.msrb.gmra.mxu2 %v4865_v11  ;;  %v1273_v36 = vperm.slane %v5162_v33, 0  ;;  %v1274_v40 = vperm.slane %v5162_v33, 1  ;;  %v1276_v63 = vperm.slane %v5162_v33, 3  ;;  %v1277_v45 = vperm.slane %v5162_v33, 4  ;;  %s2190_s8 = sshll.u32 %s3388_s7, 4  ;;  %s2191_s8 = int_to_ptr.vmem [resolvable:$true] %s2190_s8 }
 0x1ac   :  { %2019 = vmatpush.bf16.msra.mxu0 %v2876_v30  ;;  %v2932_v30 = vor.u32 %v3289_v29, %v2931_v27 }
 0x1ae   :  { %1985 = vmatpush.bf16.msrb.mxu1 %v2952_v39  ;;  %2011 = vmatpush.bf16.msrb.mxu3 %v2956_v42 }
 0x1b0   :  { %2020 = vmatpush.bf16.msra.mxu0 %v2848_v38 }
 0x1b2   :  { %1986 = vmatpush.bf16.msrb.mxu1 %v2924_v49  ;;  %2012 = vmatpush.bf16.msrb.mxu3 %v2928_v52  ;;  %v1275_v52 = vperm.slane %v5162_v33, 2 }
 0x1b4   :  { %2021 = vmatpush.bf16.msra.mxu0 %v2820_v47 }
 0x1b6   :  { %1987 = vmatpush.bf16.msrb.mxu1 %v2896_v62  ;;  %2013 = vmatpush.bf16.msrb.mxu3 %v2900_v28 }
 0x1b8   :  { %2022 = vmatpush.bf16.msra.mxu0 %v2792_v61 }
 0x1b9   :  { %1988 = vmatmul.bf16.vlgmr.msrb.gmra.mxu1 %v4932_v48  ;;  %2014 = vmatmul.bf16.vlgmr.msrb.gmra.mxu3 %v4932_v48 }
 0x1ba   :  { %2032 = vmatpush.bf16.msra.mxu1 %v3100_v0 }
 0x1bc   :  { %2023 = vmatpush.bf16.msra.mxu0 %v2764_v3 }
 0x1be   :  { %2033 = vmatpush.bf16.msra.mxu1 %v3072_v6 }
 0x1c0   :  { %2024 = vmatpush.bf16.msra.mxu0 %v2736_v9 }
 0x1c2   :  { %2034 = vmatpush.bf16.msra.mxu1 %v3044_v54 }
 0x1c4   :  { %2025 = vmatpush.bf16.msra.mxu0 %v2708_v15 }
 0x1c6   :  { %2035 = vmatpush.bf16.msra.mxu1 %v3016_v13 }
 0x1c8   :  { %2026 = vmatpush.bf16.msra.mxu0 %v2680_v20 }
 0x1ca   :  { %2036 = vmatpush.bf16.msra.mxu1 %v2988_v21 }
 0x1cb   :  { %2027 = vmatmul.bf16.vlgmr.msra.gmra.mxu0 %v4865_v11  ;;  %v2904_v11 = vor.u32 %v3282_v31, %v2903_v23 }
 0x1ce   :  { %2037 = vmatpush.bf16.msra.mxu1 %v2960_v26 }
 0x1d2   :  { %2038 = vmatpush.bf16.msra.mxu1 %v2932_v30 }
 0x1d6   :  { %2039 = vmatpush.bf16.msra.mxu1 %v2904_v11 }
 0x1d9   :  { %2040 = vmatmul.bf16.vlgmr.msra.gmra.mxu1 %v4932_v48 }
 0x208   :  { %v1872_v32 = vpop.f32.mrf.mxu0 }
 0x209   :  { %v1873_v37 = vadd.f32 %v1872_v32, %v1273_v36 }
 0x20e   :  { %v1898_v34 = vpop.f32.mrf.mxu2 }
 0x20f   :  { %v1899_v44 = vadd.f32 %v1898_v34, %v1274_v40 }
 0x210   :  { %v1874_v35 = vpop.f32.mrf.mxu0 }
 0x211   :  { %v1278_v35 = vperm.slane %v5162_v33, 5 }
 0x216   :  { %v1885_v38 = vpop.f32.mrf.mxu1  ;;  %v1900_v39 = vpop.f32.mrf.mxu2 }
 0x217   :  { %v1886_v41 = vadd.f32 %v1885_v38, %v1873_v37 }
 0x218   :  { %v1924_v42 = vpop.f32.mrf.mxu0 }
 0x219   :  { %v3101_v43 = vmul.f32 -1.442695, %v1886_v41  ;;  %v1925_v56 = vadd.f32 %v1924_v42, %v1275_v52 }
 0x21b   :  { %3334 = vpow2.f32 %v3101_v43 }
 0x21c   :  { %v1911_v48 = vpop.f32.mrf.mxu3 }
 0x21d   :  { %v1912_v46 = vadd.f32 %v1911_v48, %v1899_v44 }
 0x21e   :  { %v1887_v19 = vpop.f32.mrf.mxu1  ;;  %v1950_v47 = vpop.f32.mrf.mxu2 }
 0x21f   :  { %v3102_v49 = vmul.f32 -1.442695, %v1912_v46  ;;  %v1951_v2 = vadd.f32 %v1950_v47, %v1276_v63 }
 0x220   :  { %v1926_v50 = vpop.f32.mrf.mxu0 }
 0x221   :  { %v3335_v51 = vpop.eup %3334  ;;  %3336 = vpow2.f32 %v3102_v49 }
 0x222   :  { %v2066_v53 = vadd.f32 1.0, %v3335_v51 }
 0x224   :  { %3338 = vrcp.f32 %v2066_v53  ;;  %v1913_v55 = vpop.f32.mrf.mxu3  ;;  %v2084_v5 = vand.u32 2147483648, %v2066_v53  ;;  %v2082_v9 = vand.u32 2147483647, %v2066_v53  ;;  %vm2078_vm2 = vweird.f32 %v2066_v53 }
 0x226   :  { %v1937_v57 = vpop.f32.mrf.mxu1  ;;  %v1952_v58 = vpop.f32.mrf.mxu2  ;;  %v2085_v13 = vor.u32 1.1754944e-38, %v2084_v5  ;;  %vm2083_vm4 = vcmp.eq.f32.partialorder %v2082_v9, 8.507059e+37 }
 0x227   :  { %v3337_v59 = vpop.eup %3336  ;;  %v1938_v61 = vadd.f32 %v1937_v57, %v1925_v56 }
 0x228   :  { %v2067_v62 = vadd.f32 1.0, %v3337_v59  ;;  %v1976_v25 = vpop.f32.mrf.mxu0 }
 0x229   :  { %v3103_v28 = vmul.f32 -1.442695, %v1938_v61  ;;  %v1977_v27 = vadd.f32 %v1976_v25, %v1277_v45 }
 0x22a   :  { %v3339_v0 = vpop.eup %3338  ;;  %3340 = vrcp.f32 %v2067_v62  ;;  %v2099_v22 = vand.u32 2147483648, %v2067_v62  ;;  %v2097_v26 = vand.u32 2147483647, %v2067_v62  ;;  %vm2093_vm6 = vweird.f32 %v2067_v62 }
 0x22b   :  { %v2074_v1 = vmul.f32 %v3339_v0, %v2066_v53  ;;  %3342 = vpow2.f32 %v3103_v28  ;;  %vm2079_vm1 = vweird.f32 %v3339_v0 }
 0x22c   :  { %v1963_v4 = vpop.f32.mrf.mxu3  ;;  %vm2080_vm3 = vmor %vm2078_vm2, %vm2079_vm1  ;;  %v2100_v34 = vor.u32 1.1754944e-38, %v2099_v22  ;;  %vm2098_vm8 = vcmp.eq.f32.partialorder %v2097_v26, 8.507059e+37 }
 0x22d   :  { %v2075_v3 = vsub.f32 1.0, %v2074_v1  ;;  %v1964_v6 = vadd.f32 %v1963_v4, %v1951_v2 }
 0x22e   :  { %v1939_v7 = vpop.f32.mrf.mxu1  ;;  %v2002_v10 = vpop.f32.mrf.mxu2 }
 0x22f   :  { %v2076_v8 = vmul.f32 %v3339_v0, %v2075_v3  ;;  %v3104_v54 = vmul.f32 -1.442695, %v1964_v6  ;;  %v2003_v42 = vadd.f32 %v2002_v10, %v1278_v35 }
 0x230   :  { %v3341_v12 = vpop.eup %3340  ;;  %v1978_v60 = vpop.f32.mrf.mxu0 }
 0x231   :  { %v3343_v14 = vpop.eup %3342  ;;  %v2077_v15 = vadd.f32 %v3339_v0, %v2076_v8  ;;  %v2089_v16 = vmul.f32 %v3341_v12, %v2067_v62  ;;  %3344 = vpow2.f32 %v3104_v54  ;;  %vm2094_vm5 = vweird.f32 %v3341_v12 }
 0x232   :  { %v2068_v17 = vadd.f32 1.0, %v3343_v14  ;;  %vm2095_vm7 = vmor %vm2093_vm6, %vm2094_vm5 }
 0x233   :  { %v2081_v18 = vsel %vm2080_vm3, %v3339_v0, %v2077_v15  ;;  %v2090_v20 = vsub.f32 1.0, %v2089_v16 }
 0x234   :  { %v2086_v21 = vsel %vm2083_vm4, %v2085_v13, %v2081_v18  ;;  %3346 = vrcp.f32 %v2068_v17  ;;  %v1965_v29 = vpop.f32.mrf.mxu3  ;;  %v2114_v48 = vand.u32 2147483648, %v2068_v17  ;;  %v2112_v49 = vand.u32 2147483647, %v2068_v17 }
 0x235   :  { %2178 = vst [vmem:[#allocation2] sm:$0xff] %v2086_v21  ;;  %v2091_v24 = vmul.f32 %v3341_v12, %v2090_v20  ;;  %vm2108_vm10 = vweird.f32 %v2068_v17 }
 0x236   :  { %v1989_v30 = vpop.f32.mrf.mxu1  ;;  %v2004_v11 = vpop.f32.mrf.mxu2  ;;  %v2115_v55 = vor.u32 1.1754944e-38, %v2114_v48  ;;  %vm2113_vm12 = vcmp.eq.f32.partialorder %v2112_v49, 8.507059e+37 }
 0x237   :  { %v2092_v23 = vadd.f32 %v3341_v12, %v2091_v24  ;;  %v1990_v31 = vadd.f32 %v1989_v30, %v1977_v27  ;;  %v3345_v32 = vpop.eup %3344 }
 0x238   :  { %v2069_v37 = vadd.f32 1.0, %v3345_v32 }
 0x239   :  { %v2096_v36 = vsel %vm2095_vm7, %v3341_v12, %v2092_v23  ;;  %v3105_v38 = vmul.f32 -1.442695, %v1990_v31  ;;  %v1279_v12 = vperm.slane %v5162_v33, 6 }
 0x23a   :  { %v3347_v39 = vpop.eup %3346  ;;  %v2101_v40 = vsel %vm2098_vm8, %v2100_v34, %v2096_v36  ;;  %3348 = vrcp.f32 %v2069_v37  ;;  %v2129_v62 = vand.u32 2147483648, %v2069_v37  ;;  %v2127_v0 = vand.u32 2147483647, %v2069_v37 }
 0x23b   :  { %2179 = vst [vmem:[#allocation2 + $0x8] sm:$0xff] %v2101_v40  ;;  %v2104_v41 = vmul.f32 %v3347_v39, %v2068_v17  ;;  %3350 = vpow2.f32 %v3105_v38  ;;  %vm2109_vm9 = vweird.f32 %v3347_v39  ;;  %vm2123_vm14 = vweird.f32 %v2069_v37 }
 0x23c   :  { %v2015_v44 = vpop.f32.mrf.mxu3  ;;  %vm2110_vm11 = vmor %vm2108_vm10, %vm2109_vm9  ;;  %v2130_v3 = vor.u32 1.1754944e-38, %v2129_v62  ;;  %vm2128_vm0 = vcmp.eq.f32.partialorder %v2127_v0, 8.507059e+37 }
 0x23d   :  { %v2105_v43 = vsub.f32 1.0, %v2104_v41  ;;  %v2016_v46 = vadd.f32 %v2015_v44, %v2003_v42 }
 0x23e   :  { %v1991_v19 = vpop.f32.mrf.mxu1 }
 0x23f   :  { %v2106_v47 = vmul.f32 %v3347_v39, %v2105_v43  ;;  %v3106_v50 = vmul.f32 -1.442695, %v2016_v46 }
 0x240   :  { %v3349_v51 = vpop.eup %3348 }
 0x241   :  { %v2107_v52 = vadd.f32 %v3347_v39, %v2106_v47  ;;  %v3351_v53 = vpop.eup %3350  ;;  %v2119_v56 = vmul.f32 %v3349_v51, %v2069_v37  ;;  %3352 = vpow2.f32 %v3106_v50  ;;  %vm2124_vm13 = vweird.f32 %v3349_v51 }
 0x242   :  { %v2070_v58 = vadd.f32 1.0, %v3351_v53  ;;  %vm2125_vm15 = vmor %vm2123_vm14, %vm2124_vm13 }
 0x243   :  { %v2111_v57 = vsel %vm2110_vm11, %v3347_v39, %v2107_v52  ;;  %v2120_v61 = vsub.f32 1.0, %v2119_v56 }
 0x244   :  { %v2116_v59 = vsel %vm2113_vm12, %v2115_v55, %v2111_v57  ;;  %3354 = vrcp.f32 %v2070_v58  ;;  %v2017_v63 = vpop.f32.mrf.mxu3  ;;  %v2144_v54 = vand.u32 2147483648, %v2070_v58  ;;  %v2142_v14 = vand.u32 2147483647, %v2070_v58 }
 0x245   :  { %2180 = vst [vmem:[#allocation2 + $0x10] sm:$0xff] %v2116_v59  ;;  %v2121_v28 = vmul.f32 %v3349_v51, %v2120_v61  ;;  %vm2138_vm2 = vweird.f32 %v2070_v58 }
 0x246   :  { %v2145_v17 = vor.u32 1.1754944e-38, %v2144_v54  ;;  %vm2143_vm4 = vcmp.eq.f32.partialorder %v2142_v14, 8.507059e+37 }
 0x247   :  { %v3353_v1 = vpop.eup %3352  ;;  %v2122_v2 = vadd.f32 %v3349_v51, %v2121_v28 }
 0x248   :  { %v2028_v25 = vpop.f32.mrf.mxu0  ;;  %v2071_v4 = vadd.f32 1.0, %v3353_v1 }
 0x249   :  { %v2126_v5 = vsel %vm2125_vm15, %v3349_v51, %v2122_v2  ;;  %v2029_v13 = vadd.f32 %v2028_v25, %v1279_v12 }
 0x24a   :  { %v3355_v6 = vpop.eup %3354  ;;  %v2131_v7 = vsel %vm2128_vm0, %v2130_v3, %v2126_v5  ;;  %3356 = vrcp.f32 %v2071_v4  ;;  %v2159_v26 = vand.u32 2147483648, %v2071_v4  ;;  %v2157_v27 = vand.u32 2147483647, %v2071_v4 }
 0x24b   :  { %2181 = vst [vmem:[#allocation2 + $0x18] sm:$0xff] %v2131_v7  ;;  %v2134_v8 = vmul.f32 %v3355_v6, %v2070_v58  ;;  %vm2139_vm1 = vweird.f32 %v3355_v6  ;;  %vm2153_vm6 = vweird.f32 %v2071_v4 }
 0x24c   :  { %vm2140_vm3 = vmor %vm2138_vm2, %vm2139_vm1  ;;  %v2160_v23 = vor.u32 1.1754944e-38, %v2159_v26  ;;  %vm2158_vm8 = vcmp.eq.f32.partialorder %v2157_v27, 8.507059e+37 }
 0x24d   :  { %v2135_v10 = vsub.f32 1.0, %v2134_v8 }
 0x24f   :  { %v2136_v60 = vmul.f32 %v3355_v6, %v2135_v10 }
 0x250   :  { %v2030_v9 = vpop.f32.mrf.mxu0  ;;  %v3357_v15 = vpop.eup %3356 }
 0x251   :  { %v2137_v16 = vadd.f32 %v3355_v6, %v2136_v60  ;;  %v2149_v45 = vmul.f32 %v3357_v15, %v2071_v4  ;;  %vm2154_vm5 = vweird.f32 %v3357_v15 }
 0x252   :  { %vm2155_vm7 = vmor %vm2153_vm6, %vm2154_vm5 }
 0x253   :  { %v2141_v20 = vsel %vm2140_vm3, %v3355_v6, %v2137_v16  ;;  %v2150_v21 = vsub.f32 1.0, %v2149_v45 }
 0x254   :  { %v2146_v24 = vsel %vm2143_vm4, %v2145_v17, %v2141_v20 }
 0x255   :  { %2182 = vst [vmem:[#allocation2 + $0x20] sm:$0xff] %v2146_v24  ;;  %v2151_v33 = vmul.f32 %v3357_v15, %v2150_v21 }
 0x256   :  { %v2041_v18 = vpop.f32.mrf.mxu1 }
 0x257   :  { %v2042_v22 = vadd.f32 %v2041_v18, %v2029_v13  ;;  %v2152_v30 = vadd.f32 %v3357_v15, %v2151_v33 }
 0x259   :  { %v3107_v29 = vmul.f32 -1.442695, %v2042_v22  ;;  %v2156_v31 = vsel %vm2155_vm7, %v3357_v15, %v2152_v30 }
 0x25a   :  { %v2161_v11 = vsel %vm2158_vm8, %v2160_v23, %v2156_v31 }
 0x25b   :  { %3358 = vpow2.f32 %v3107_v29  ;;  %2183 = vst [vmem:[#allocation2 + $0x28] sm:$0xff] %v2161_v11 }
 0x25e   :  { %v2043_v32 = vpop.f32.mrf.mxu1 }
 0x261   :  { %v3359_v34 = vpop.eup %3358 }
 0x262   :  { %v2072_v35 = vadd.f32 1.0, %v3359_v34 }
 0x264   :  { %3360 = vrcp.f32 %v2072_v35  ;;  %v2174_v39 = vand.u32 2147483648, %v2072_v35  ;;  %v2172_v41 = vand.u32 2147483647, %v2072_v35  ;;  %vm2168_vm10 = vweird.f32 %v2072_v35 }
 0x266   :  { %v2175_v43 = vor.u32 1.1754944e-38, %v2174_v39  ;;  %vm2173_vm12 = vcmp.eq.f32.partialorder %v2172_v41, 8.507059e+37 }
 0x26a   :  { %v3361_v36 = vpop.eup %3360 }
 0x26b   :  { %v2164_v37 = vmul.f32 %v3361_v36, %v2072_v35  ;;  %vm2169_vm9 = vweird.f32 %v3361_v36 }
 0x26c   :  { %vm2170_vm11 = vmor %vm2168_vm10, %vm2169_vm9 }
 0x26d   :  { %v2165_v38 = vsub.f32 1.0, %v2164_v37 }
 0x26f   :  { %v2166_v40 = vmul.f32 %v3361_v36, %v2165_v38 }
 0x271   :  { %v2167_v42 = vadd.f32 %v3361_v36, %v2166_v40 }
 0x273   :  { %v2171_v44 = vsel %vm2170_vm11, %v3361_v36, %v2167_v42 }
 0x274   :  { %v2176_v48 = vsel %vm2173_vm12, %v2175_v43, %v2171_v44 }
 0x275   :  { %2184 = vst [vmem:[#allocation2 + $0x30] sm:$0xff] %v2176_v48 }
 0x276   :  { %2195 = dma.vmem_to_hbm [thread:$0]  %s2191_s8, 896, %s2193_s26, [#allocation3]  }
 0x277   :  { %3386 = dma.done.wait [#allocation3], 896  }
 0x278   :  { %3387 = vsyncadd [#allocation3], 4294966400 }
 0x279   :  { %2204 = vsyncpa [#allocation3], 1 }

</bundles_post_ra>
